<compile_context>
chip_gen: v6e
topology: v6e:2x2x1
jax: 0.10.0
libtpu: 0.0.40
codegen_flags: <defaults>
</compile_context>

<pallas_src>
import jax
import jax.numpy as jnp
from jax import lax
from jax.experimental import pallas as pl
from jax.experimental.pallas import tpu as pltpu


_SUBLANE = 8
_LANE = 128
_TILE = _SUBLANE * _LANE  # elements per (8,128) f32 vreg tile


def _gelu_kernel(x_ref, o_ref):
    # Exact GELU, matching torch.nn.GELU(approximate='none'):
    #   gelu(x) = 0.5 * x * (1 + erf(x / sqrt(2)))
    xf = x_ref[...].astype(jnp.float32)
    inv_sqrt2 = jnp.float32(0.7071067811865476)
    y = 0.5 * xf * (1.0 + lax.erf(xf * inv_sqrt2))
    o_ref[...] = y.astype(o_ref.dtype)


def _target_blocks():
    """Preferred grid length per chip generation.

    v5e/v6e (one TensorCore): 2 blocks — per-grid-step overhead is a big slice
    of the ~1-3 us roofline for this ~1.2 MiB tensor, so fewer/bigger blocks
    win while still overlapping DMA-in / compute / DMA-out.
    v7x (two TensorCores): ask for an even count >= 4 so each core gets >= 2
    pipelined steps after the ("parallel",) axis is sharded across cores.
    """
    try:
        kind = jax.devices()[0].device_kind.lower()
        if "v7" in kind:
            return 4
    except Exception:
        pass
    return 2


def _choose_layout(total_elems, target_blocks):
    """Pick (n_blocks, rows_per_block, cols) such that
         n_blocks * rows_per_block * cols == total_elems,
         rows_per_block % 8 == 0 and cols % 128 == 0.
    Blocks are cut along the slow (sublane/row) axis of a row-major slab, so
    each block is one fully contiguous, fully tile-aligned DMA.
    Returns None if no such layout exists (caller falls back to a full block).
    """
    if total_elems % _TILE != 0:
        return None
    units = total_elems // _TILE  # number of whole (8,128) tiles

    divisors = [d for d in range(1, units + 1) if units % d == 0]
    n_blocks = None
    for d in divisors:  # smallest even divisor >= target (core balance on v7x)
        if d >= target_blocks and d % 2 == 0:
            n_blocks = d
            break
    if n_blocks is None:  # no even divisor: largest divisor <= target
        n_blocks = max(d for d in divisors if d <= max(target_blocks, 1))

    per_block_units = units // n_blocks
    # Lane width: widest multiple of 128 (<= 1024 lanes) whose lane-group
    # count divides the per-block tile count, keeping rows a multiple of 8.
    cols = _LANE
    for lane_groups in range(min(per_block_units, 8), 0, -1):
        if per_block_units % lane_groups == 0:
            cols = lane_groups * _LANE
            break
    rows_per_block = (per_block_units // (cols // _LANE)) * _SUBLANE
    return n_blocks, rows_per_block, cols


def gelu_pallas(x, *, donate_input=False):
    """Exact (erf) GELU on an arbitrary tensor via a Pallas TPU kernel.

    Elementwise op, so the tensor is viewed as an (8,128)-aligned 2D slab
    (a free reshape for a contiguous array, undone on the way out) and split
    into a small, even number of contiguous row-blocks for pipelining /
    megacore sharding.
    """
    # TODO(synk): for best end-to-end perf this ~1.2 MiB epilogue should be
    # fused into the producing matmul/conv (or left to XLA fusion) rather than
    # paying a standalone HBM read+write; kept standalone to match the module.
    orig_shape = x.shape
    total = x.size

    layout = _choose_layout(total, _target_blocks())
    if layout is None:
        # Fallback: keep the channel dim on lanes, single full-array block
        # (full-dim block satisfies the (8,128) rule even if unaligned).
        c = orig_shape[-1]
        n_blocks, rows_per_block, cols = 1, total // c, c
    else:
        n_blocks, rows_per_block, cols = layout

    x2d = x.reshape(n_blocks * rows_per_block, cols)

    cost = pl.CostEstimate(
        # erf lowers to an f32 polynomial on the VALU (not an EUP
        # transcendental); fold its cost into flops.
        flops=40 * total,
        transcendentals=0,
        bytes_accessed=2 * total * x.dtype.itemsize,  # 1 read + 1 write
    )

    out2d = pl.pallas_call(
        _gelu_kernel,
        out_shape=jax.ShapeDtypeStruct(x2d.shape, x.dtype),
        grid=(n_blocks,),
        in_specs=[pl.BlockSpec((rows_per_block, cols), lambda i: (i, 0))],
        out_specs=pl.BlockSpec((rows_per_block, cols), lambda i: (i, 0)),
        compiler_params=pltpu.CompilerParams(
            dimension_semantics=("parallel",),
        ),
        cost_estimate=cost,
        # Optional in-place update: only valid if the caller actually donates
        # x at the jit boundary and never reuses it afterwards.
        input_output_aliases={0: 0} if donate_input else {},
    )(x2d)

    return out2d.reshape(orig_shape)


if __name__ == "__main__":
    key = jax.random.PRNGKey(0)
    # Shape from the module's forward: [1, 14, 14, 1536] (channels-last).
    x = jax.random.normal(key, (1, 14, 14, 1536), dtype=jnp.float32)

    y = gelu_pallas(x)
    jax.block_until_ready(y)

    # Check against the exact-GELU JAX reference.
    y_ref = jax.nn.gelu(x, approximate=False)
    assert y.shape == x.shape and y.dtype == x.dtype
    assert jnp.max(jnp.abs(y - y_ref)) < 1e-5

    print("KERNEL_OK")
</pallas_src>

<mosaic_0001>
module attributes {stable_mosaic.version = 11 : i64} {
  func.func @_gelu_kernel(%arg0: i32, %arg1: memref<168x896xf32, #tpu.memory_space<vmem>>, %arg2: memref<168x896xf32, #tpu.memory_space<vmem>>) attributes {dimension_semantics = [#tpu.dimension_semantics<parallel>], iteration_bounds = array<i64: 2>, scalar_prefetch = 0 : i64, scratch_operands = 0 : i64, tpu.core_type = #tpu.core_type<tc>, window_params = [{transform_indices = @transform_0, window_bounds = array<i64: 168, 896>}, {transform_indices = @transform_1, window_bounds = array<i64: 168, 896>}]} {
    %c0 = arith.constant 0 : index
    %c0_0 = arith.constant 0 : index
    %0 = vector.load %arg1[%c0, %c0_0] : memref<168x896xf32, #tpu.memory_space<vmem>>, vector<168x896xf32>
    %cst = arith.constant 5.000000e-01 : f32
    %1 = vector.broadcast %cst : f32 to vector<168x896xf32>
    %2 = arith.mulf %1, %0 : vector<168x896xf32>
    %cst_1 = arith.constant 0.707106769 : f32
    %3 = vector.broadcast %cst_1 : f32 to vector<168x896xf32>
    %4 = arith.mulf %0, %3 : vector<168x896xf32>
    %5 = math.erf %4 : vector<168x896xf32>
    %cst_2 = arith.constant 1.000000e+00 : f32
    %6 = vector.broadcast %cst_2 : f32 to vector<168x896xf32>
    %7 = arith.addf %6, %5 : vector<168x896xf32>
    %8 = arith.mulf %2, %7 : vector<168x896xf32>
    %c0_3 = arith.constant 0 : index
    %c0_4 = arith.constant 0 : index
    %9 = vector.load %arg2[%c0_3, %c0_4] : memref<168x896xf32, #tpu.memory_space<vmem>>, vector<168x896xf32>
    tpu.vector_store %arg2[%c0_3, %c0_4], %8 {strides = array<i32>} : memref<168x896xf32, #tpu.memory_space<vmem>>, vector<168x896xf32>,
    return
  }
  func.func @transform_0(%arg0: i32) -> (i32, i32) {
    %c0_i32 = arith.constant 0 : i32
    %c0_i32_0 = arith.constant 0 : i32
    return %arg0, %c0_i32 : i32, i32
  }
  func.func @transform_1(%arg0: i32) -> (i32, i32) {
    %c0_i32 = arith.constant 0 : i32
    %c0_i32_0 = arith.constant 0 : i32
    return %arg0, %c0_i32 : i32, i32
  }
}

</mosaic_0001>

<bundles_post_ra>
// kernel: tpu_custom_call.1
= control target key start
LH: loop header
LB: loop body
LE: loop exit
PB: predicated region body
PF: predicated region fallthrough
CT: control target
= control target key end

     0   :  { %6 = vsyncpa [#allocation3], 0  ;;  %s2747_s0 = inlined_call_operand.hbm [shape: f32[336,896], index: 0, kind: input, shape index: {}]   ;;  %s2748_s1 = inlined_call_operand.hbm [shape: f32[336,896], index: 1, kind: output, shape index: {}]  }
   0x1   :  { %8 = vsyncpa [#allocation3 + $0x1], 0 }
   0x2   :  { %9 = vsyncpa [#allocation4], 0 }
   0x3   :  { %11 = vsyncpa [#allocation4 + $0x1], 0  ;;  %s1723_s6 = smov 0   ;;  %s1725_s7 = smov 0  }
   0x4   :  { %s1727_s8 = smov 0   ;;  %s1729_s9 = smov 0  }
   0x5 LB: > { %s1744_s10 = sadd.s32 4294967295, %s1705_s9   ;;  %s1255_s11 = sadd.s32 4294967294, %s1705_s9   ;;  %s1705_s9 = sphi %s1729_s9, %s2763_s9   ;;  %s1701_s8 = sphi %s1727_s8, %s2762_s8   ;;  %s1697_s7 = sphi %s1725_s7, %s2761_s7   ;;  %s1693_s6 = sphi %s1723_s6, %s2760_s6  }
   0x6   : > { %s1748_s12 = sadd.s32 1, %s1705_s9   ;;  %s24_s13 = sadd.s32 1, %s1701_s8 }
   0x7   : > { %s21_s14 = ssub.s32 %s1705_s9, %s1748_s12  ;;  %p31_p0 = scmp.ne.s32.totalorder %s1701_s8, %s1697_s7 }
   0x8   : > { %p22_p1 = scmp.eq.s32.totalorder %s21_s14, 0  ;;  %p32_p2 = scmp.eq.s32.totalorder %s1705_s9, 0 }
   0x9   : > { %p37_p3 = scmp.ne.s32.totalorder %s1697_s7, %s1693_s6  ;;  %p38_p4 = scmp.eq.s32.totalorder %s1744_s10, 0 }
   0xa   : > { %s1760_s15 = scalar_select %p22_p1, %s1701_s8, %s24_s13  }
   0xb   : > { %p33_p5 = por %p32_p2, %p31_p0  ;;  %p1762_p6 = por %p38_p4, %p37_p3 }
   0xc   : > { %p61_p7 = scmp.eq.s32.totalorder %s1744_s10, 1  ;;  %p67_p8 = scmp.eq.s32.totalorder %s1255_s11, 1 }
   0xd   : > { %s2751_s16 = scalar_select %p1762_p6, 1, 0 }
   0xe   : > { %p1279_p10 = scmp.lt.s32.totalorder %s1705_s9, 2  ;;  %p1769_p11 = por %p61_p7, %p31_p0 }
   0xf   : > { %p1773_p12 = por %p67_p8, %p37_p3  ;;  %s87_s19 = sand.u32 1, %s1701_s8  }
  0x10   : > { %s2752_s17 = scalar_select %p1769_p11, 1, 0 }
  0x11   : > { %s2753_s18 = scalar_select %p1773_p12, 1, 0 }
  0x12   : > { %s1263_s20 = smul.u32 1176, %s87_s19  ;;  %p1779_p13 = pnand %p1279_p10, %p33_p5 }
  0x13   : > { %s1280_s21 = smul.u32 18816, %s1705_s9  ;;  %s1791_s28 = scalar_lea.sflag [#allocation3], %s87_s19 }
  0x14   : > { %s91_s26 = scalar_lea.vmem [#allocation2], %s1263_s20  ;;  %p1615_p2 = pneg %p1779_p13 }
  0x15   : > { %s1786_s25 = scalar_lea.hbm %s2747_s0, %s1280_s21  ;;  %s99_s27 = sshll.u32 %s91_s26, 4  ;;  %s1788_s27 = int_to_ptr.vmem [resolvable:$true] %s99_s27 }
  0x16   : > { %s1613_s29 = scalar_lea.hbm %s1786_s25, 18816  ;;  %s1618_s3 = scalar_lea.hbm %s2747_s0, 37632 }
  0x17   : > { %p1614_p1 = scmp.ne.s32.totalorder %s1786_s25, %s1613_s29  ;;  %p1619_p5 = scmp.lt.s32.totalorder %s1786_s25, %s2747_s0 }
  0x18   : > { %p1620_p7 = scmp.lt.s32.totalorder %s1618_s3, %s1613_s29 }
  0x19   : > { %p1616_p3 = pnand %p1615_p2, %p1614_p1 }
  0x1a   : > { %p1621_p8 = por %p1620_p7, %p1619_p5 }
  0x1b   : > { %p1617_p4 = pneg %p1616_p3 }
  0x1d   : > { %p1622_p10 = pnand %p1621_p8, %p1617_p4 }
  0x1f   : > { %1625 = shalt.err (!%p1622_p10)
}
  0x20   : > { %s1626_s11 = scalar_lea.vmem %s1788_s27, 18816  ;;  %s1707_s13 = smov [#allocation2]  }
  0x21   : > { %p1627_p9 = scmp.ne.s32.totalorder %s1788_s27, %s1626_s11  ;;  %s1631_s14 = sshll.u32 %s1707_s13, 4  ;;  %s1632_s14 = int_to_ptr.vmem [resolvable:$false] %s1631_s14 }
  0x22   : > { %s1633_s19 = scalar_lea.vmem %s1632_s14, 37632  ;;  %p1634_p3 = scmp.lt.s32.totalorder %s1788_s27, %s1632_s14 }
  0x23   : > { %p1629_p0 = pnand %p1627_p9, %p1615_p2  ;;  %p1635_p12 = scmp.lt.s32.totalorder %s1633_s19, %s1626_s11 }
  0x25   : > { %p1630_p1 = pneg %p1629_p0  ;;  %p1636_p11 = por %p1635_p12, %p1634_p3 }
  0x27   : > { %p1637_p6 = pnand %p1636_p11, %p1630_p1 }
  0x29   : > { %1640 = shalt.err (!%p1637_p6)
}
  0x2a   : > { %s1708_s20 = smov 896   ;;  %s1709_s21 = smov 56  }
  0x2b   : > { %1274 = dma.hbm_to_vmem [thread:$0]  (!%p1779_p13), %s1786_s25, 18816, %s1788_s27, %s1791_s28, %s1708_s20, %s1708_s20, %s1709_s21  }
  0x2c   : > { %p107_p9 = scmp.lt.s32.totalorder %s1705_s9, 3  ;;  %p2755_p0 = scmp.ge.s32.totalorder %s1705_s9, 1 }
  0x2e   : > { %p108_p2 = pnand %p2755_p0, %p107_p9 }
  0x2f   : > { %s1816_s23 = sand.u32 (!%p108_p2), 1, %s1697_s7   ;;  %p2756_p6 = scmp.ne.s32.totalorder (!%p108_p2), %s2751_s16, 0 }
  0x30   : > { %111 = sbr.rel (%p108_p2) target bundleno = 263 (0x107), region = 24  ;;  %s114_s26 = scalar_lea.sflag (!%p108_p2), [#allocation3], %s1816_s23 }
  0x31   : > { %s1265_s24 = smul.u32 (!%p108_p2), 1176, %s1816_s23 }
  0x33   : > { %s1822_s29 = scalar_lea.vmem (!%p108_p2), [#allocation2], %s1265_s24 }
  0x35   : > { %1684 = dma.done.wait (%p2756_p6), %s114_s26, 18816  }
  0x36   : > { %1686 = vsyncadd (%p2756_p6), %s114_s26, 4294948480  ;;  %v138_v0 = vld [vmem:[%s1822_s29] sm:$0xff]  ;;  %v139_v1 = vld [vmem:[%s1822_s29 + $0x8] sm:$0xff]  ;;  %s1907_s16 = scalar_lea.vmem [#allocation5], %s1265_s24  ;;  %s1281_s22 = smul.u32 18816, %s1744_s10 }
  0x37   : > { %v140_v2 = vld [vmem:[%s1822_s29 + $0x10] sm:$0xff]  ;;  %v432_v3 = vmul.f32 0.70710677, %v138_v0  ;;  %v433_v4 = vmul.f32 0.70710677, %v139_v1  ;;  %v141_v6 = vld [vmem:[%s1822_s29 + $0x18] sm:$0xff] }
  0x38   : > { %v434_v5 = vmul.f32 0.70710677, %v140_v2  ;;  %v142_v7 = vld [vmem:[%s1822_s29 + $0x20] sm:$0xff]  ;;  %v143_v8 = vld [vmem:[%s1822_s29 + $0x28] sm:$0xff]  ;;  %v435_v9 = vmul.f32 0.70710677, %v141_v6  ;;  %s2699_s28 = scalar_lea.hbm %s2748_s1, %s1281_s22 }
  0x39   : > { %1319 = verf.f32 %v432_v3  ;;  %v144_v10 = vld [vmem:[%s1822_s29 + $0x30] sm:$0xff]  ;;  %v145_v11 = vld [vmem:[%s1822_s29 + $0x38] sm:$0xff]  ;;  %v436_v12 = vmul.f32 0.70710677, %v142_v7  ;;  %v437_v13 = vmul.f32 0.70710677, %v143_v8 }
  0x3a   : > { %1321 = verf.f32 %v433_v4  ;;  %v146_v14 = vld [vmem:[%s1822_s29 + $0x40] sm:$0xff]  ;;  %v438_v15 = vmul.f32 0.70710677, %v144_v10  ;;  %v147_v16 = vld [vmem:[%s1822_s29 + $0x48] sm:$0xff]  ;;  %v1838_v17 = vmul.f32 0.5, %v138_v0  ;;  %v148_v19 = vld [vmem:[%s1822_s29 + $0x50] sm:$0xff] }
  0x3b   : > { %1323 = verf.f32 %v434_v5  ;;  %v439_v18 = vmul.f32 0.70710677, %v145_v11  ;;  %v1841_v20 = vmul.f32 0.5, %v139_v1  ;;  %v1843_v21 = vmul.f32 0.5, %v140_v2  ;;  %v149_v23 = vld [vmem:[%s1822_s29 + $0x58] sm:$0xff]  ;;  %v150_v27 = vld [vmem:[%s1822_s29 + $0x60] sm:$0xff] }
  0x3c   : > { %1325 = verf.f32 %v435_v9  ;;  %v440_v22 = vmul.f32 0.70710677, %v146_v14  ;;  %v1846_v24 = vmul.f32 0.5, %v141_v6  ;;  %v1848_v25 = vmul.f32 0.5, %v142_v7  ;;  %v151_v31 = vld [vmem:[%s1822_s29 + $0x68] sm:$0xff]  ;;  %v152_v35 = vld [vmem:[%s1822_s29 + $0x70] sm:$0xff] }
  0x3d   : > { %1327 = verf.f32 %v436_v12  ;;  %v441_v26 = vmul.f32 0.70710677, %v147_v16  ;;  %v1851_v28 = vmul.f32 0.5, %v143_v8  ;;  %v1853_v29 = vmul.f32 0.5, %v144_v10  ;;  %v153_v39 = vld [vmem:[%s1822_s29 + $0x78] sm:$0xff]  ;;  %v154_v43 = vld [vmem:[%s1822_s29 + $0x80] sm:$0xff] }
  0x3e   : > { %1329 = verf.f32 %v437_v13  ;;  %v442_v30 = vmul.f32 0.70710677, %v148_v19  ;;  %v1856_v32 = vmul.f32 0.5, %v145_v11  ;;  %v1858_v33 = vmul.f32 0.5, %v146_v14  ;;  %v155_v44 = vld [vmem:[%s1822_s29 + $0x88] sm:$0xff]  ;;  %v156_v48 = vld [vmem:[%s1822_s29 + $0x90] sm:$0xff] }
  0x3f   : > { %1331 = verf.f32 %v438_v15  ;;  %v443_v34 = vmul.f32 0.70710677, %v149_v23  ;;  %v1861_v36 = vmul.f32 0.5, %v147_v16  ;;  %v1863_v37 = vmul.f32 0.5, %v148_v19  ;;  %v157_v52 = vld [vmem:[%s1822_s29 + $0x98] sm:$0xff]  ;;  %v158_v56 = vld [vmem:[%s1822_s29 + $0xa0] sm:$0xff] }
  0x40   : > { %1333 = verf.f32 %v439_v18  ;;  %v444_v38 = vmul.f32 0.70710677, %v150_v27  ;;  %v1866_v40 = vmul.f32 0.5, %v149_v23  ;;  %v1868_v41 = vmul.f32 0.5, %v150_v27  ;;  %v159_v61 = vld [vmem:[%s1822_s29 + $0xa8] sm:$0xff]  ;;  %v160_v6 = vld [vmem:[%s1822_s29 + $0xb0] sm:$0xff] }
  0x41   : > { %1335 = verf.f32 %v440_v22  ;;  %v445_v42 = vmul.f32 0.70710677, %v151_v31  ;;  %v1872_v45 = vmul.f32 0.5, %v151_v31  ;;  %v1874_v46 = vmul.f32 0.5, %v152_v35  ;;  %v1897_v11 = vld [vmem:[%s1822_s29 + $0xb8] sm:$0xff]  ;;  %v1903_v16 = vld [vmem:[%s1822_s29 + $0xc0] sm:$0xff] }
  0x42   : > { %1337 = verf.f32 %v441_v26  ;;  %v446_v47 = vmul.f32 0.70710677, %v152_v35  ;;  %v1877_v49 = vmul.f32 0.5, %v153_v39  ;;  %v447_v50 = vmul.f32 0.70710677, %v153_v39  ;;  %v1912_v22 = vld [vmem:[%s1822_s29 + $0xc8] sm:$0xff] }
  0x43   : > { %1339 = verf.f32 %v442_v30  ;;  %v1879_v51 = vmul.f32 0.5, %v154_v43  ;;  %v448_v53 = vmul.f32 0.70710677, %v154_v43  ;;  %v1882_v54 = vmul.f32 0.5, %v155_v44  ;;  %v1918_v31 = vld [vmem:[%s1822_s29 + $0xd0] sm:$0xff]  ;;  %v1924_v39 = vld [vmem:[%s1822_s29 + $0xd8] sm:$0xff] }
  0x44   : > { %1341 = verf.f32 %v443_v34  ;;  %v449_v55 = vmul.f32 0.70710677, %v155_v44  ;;  %v1885_v58 = vmul.f32 0.5, %v156_v48  ;;  %v450_v59 = vmul.f32 0.70710677, %v156_v48  ;;  %s1182_s25 = sshll.u32 %s1907_s16, 4  ;;  %s2701_s25 = int_to_ptr.vmem [resolvable:$true] %s1182_s25 }
  0x45   : > { %1343 = verf.f32 %v444_v38  ;;  %v1887_v60 = vmul.f32 0.5, %v157_v52  ;;  %v451_v0 = vmul.f32 0.70710677, %v157_v52  ;;  %v1890_v1 = vmul.f32 0.5, %v158_v56  ;;  %s1168_s30 = scalar_lea.sflag [#allocation4], %s1816_s23  ;;  %s1641_s2 = scalar_lea.vmem %s2701_s25, 18816 }
  0x46   : > { %v1320_v57 = vpop.eup %1319  ;;  %1345 = verf.f32 %v445_v42  ;;  %v452_v4 = vmul.f32 0.70710677, %v158_v56  ;;  %v1892_v5 = vmul.f32 0.5, %v159_v61  ;;  %v453_v10 = vmul.f32 0.70710677, %v159_v61  ;;  %p1642_p11 = scmp.ne.s32.totalorder %s2701_s25, %s1641_s2  ;;  %p2757_p12 = scmp.ne.s32.totalorder %s2752_s17, 0 }
  0x47   : > { %v1322_v62 = vpop.eup %1321  ;;  %v726_v63 = vadd.f32 1.0, %v1320_v57  ;;  %1347 = verf.f32 %v446_v47  ;;  %v1900_v15 = vmul.f32 0.5, %v160_v6  ;;  %v455_v30 = vmul.f32 0.70710677, %v1897_v11  ;;  %v1930_v47 = vld [vmem:[%s1822_s29 + $0xe0] sm:$0xff]  ;;  %s1710_s3 = smov [#allocation5]  }
  0x48   : > { %v1324_v2 = vpop.eup %1323  ;;  %v727_v3 = vadd.f32 1.0, %v1322_v62  ;;  %1349 = verf.f32 %v447_v50  ;;  %v456_v38 = vmul.f32 0.70710677, %v1903_v16  ;;  %v457_v44 = vmul.f32 0.70710677, %v1912_v22  ;;  %p1643_p13 = pnand %p1642_p11, %p2757_p12  ;;  %s1645_s4 = sshll.u32 %s1710_s3, 4  ;;  %s1646_s4 = int_to_ptr.vmem [resolvable:$false] %s1645_s4 }
  0x49   : > { %v1326_v7 = vpop.eup %1325  ;;  %v873_v8 = vmul.f32 %v726_v63, %v1838_v17  ;;  %v728_v9 = vadd.f32 1.0, %v1324_v2  ;;  %1351 = verf.f32 %v448_v53  ;;  %v458_v52 = vmul.f32 0.70710677, %v1918_v31  ;;  %v1936_v53 = vld [vmem:[%s1822_s29 + $0xe8] sm:$0xff]  ;;  %s1647_s5 = scalar_lea.vmem %s1646_s4, 37632  ;;  %p1648_p5 = scmp.lt.s32.totalorder %s2701_s25, %s1646_s4 }
  0x4a   : > { %v1328_v12 = vpop.eup %1327  ;;  %v874_v13 = vmul.f32 %v727_v3, %v1841_v20  ;;  %v729_v14 = vadd.f32 1.0, %v1326_v7  ;;  %1353 = verf.f32 %v449_v55  ;;  %v454_v20 = vmul.f32 0.70710677, %v160_v6  ;;  %p1644_p4 = pneg %p1643_p13  ;;  %p1649_p7 = scmp.lt.s32.totalorder %s1647_s5, %s1641_s2 }
  0x4b   : > { %v1330_v18 = vpop.eup %1329  ;;  %1020 = vst [vmem:[%s1907_s16] sm:$0xff] %v873_v8  ;;  %v875_v17 = vmul.f32 %v728_v9, %v1843_v21  ;;  %v730_v19 = vadd.f32 1.0, %v1328_v12  ;;  %1355 = verf.f32 %v450_v59  ;;  %v459_v57 = vmul.f32 0.70710677, %v1924_v39  ;;  %v1942_v59 = vld [vmem:[%s1822_s29 + $0xf0] sm:$0xff]  ;;  %v1957_v9 = vld [vmem:[%s1822_s29 + $0x100] sm:$0xff] }
  0x4c   : > { %v1332_v23 = vpop.eup %1331  ;;  %1021 = vst [vmem:[%s1907_s16 + $0x8] sm:$0xff] %v874_v13  ;;  %v876_v26 = vmul.f32 %v729_v14, %v1846_v24  ;;  %v731_v27 = vadd.f32 1.0, %v1330_v18  ;;  %1357 = verf.f32 %v451_v0  ;;  %v460_v63 = vmul.f32 0.70710677, %v1930_v47  ;;  %v1948_v0 = vld [vmem:[%s1822_s29 + $0xf8] sm:$0xff]  ;;  %p1650_p8 = por %p1649_p7, %p1648_p5 }
  0x4d   : > { %v1334_v21 = vpop.eup %1333  ;;  %1022 = vst [vmem:[%s1907_s16 + $0x10] sm:$0xff] %v875_v17  ;;  %v877_v34 = vmul.f32 %v730_v19, %v1848_v25  ;;  %v732_v35 = vadd.f32 1.0, %v1332_v23  ;;  %1359 = verf.f32 %v452_v4  ;;  %v461_v4 = vmul.f32 0.70710677, %v1936_v53  ;;  %v1968_v19 = vld [vmem:[%s1822_s29 + $0x108] sm:$0xff] }
  0x4e   : > { %v1336_v24 = vpop.eup %1335  ;;  %1023 = vst [vmem:[%s1907_s16 + $0x18] sm:$0xff] %v876_v26  ;;  %v878_v42 = vmul.f32 %v731_v27, %v1851_v28  ;;  %v733_v43 = vadd.f32 1.0, %v1334_v21  ;;  %1361 = verf.f32 %v453_v10  ;;  %v462_v8 = vmul.f32 0.70710677, %v1942_v59  ;;  %v1979_v21 = vld [vmem:[%s1822_s29 + $0x110] sm:$0xff]  ;;  %p1651_p10 = pnand %p1650_p8, %p1644_p4 }
  0x4f   : > { %v1338_v25 = vpop.eup %1337  ;;  %1024 = vst [vmem:[%s1907_s16 + $0x20] sm:$0xff] %v877_v34  ;;  %v879_v48 = vmul.f32 %v732_v35, %v1853_v29  ;;  %v734_v50 = vadd.f32 1.0, %v1336_v24  ;;  %1363 = verf.f32 %v454_v20  ;;  %v463_v13 = vmul.f32 0.70710677, %v1948_v0  ;;  %v1985_v24 = vld [vmem:[%s1822_s29 + $0x118] sm:$0xff] }
  0x50   : > { %v1340_v28 = vpop.eup %1339  ;;  %1025 = vst [vmem:[%s1907_s16 + $0x28] sm:$0xff] %v878_v42  ;;  %v880_v55 = vmul.f32 %v733_v43, %v1856_v32  ;;  %v735_v56 = vadd.f32 1.0, %v1338_v25  ;;  %1365 = verf.f32 %v455_v30  ;;  %v1965_v17 = vmul.f32 0.5, %v1897_v11 }
  0x51   : > { %v1342_v29 = vpop.eup %1341  ;;  %1026 = vst [vmem:[%s1907_s16 + $0x30] sm:$0xff] %v879_v48  ;;  %v881_v61 = vmul.f32 %v734_v50, %v1858_v33  ;;  %v736_v62 = vadd.f32 1.0, %v1340_v28  ;;  %1367 = verf.f32 %v456_v38  ;;  %v464_v26 = vmul.f32 0.70710677, %v1957_v9  ;;  %v1994_v50 = vld [vmem:[%s1822_s29 + $0x120] sm:$0xff] }
  0x52   : > { %v1344_v32 = vpop.eup %1343  ;;  %1027 = vst [vmem:[%s1907_s16 + $0x38] sm:$0xff] %v880_v55  ;;  %v882_v2 = vmul.f32 %v735_v56, %v1861_v36  ;;  %v737_v3 = vadd.f32 1.0, %v1342_v29  ;;  %1369 = verf.f32 %v457_v44  ;;  %v1976_v30 = vmul.f32 0.5, %v1903_v16  ;;  %v2001_v56 = vld [vmem:[%s1822_s29 + $0x128] sm:$0xff] }
  0x53   : > { %v1346_v6 = vpop.eup %1345  ;;  %1028 = vst [vmem:[%s1907_s16 + $0x40] sm:$0xff] %v881_v61  ;;  %v883_v33 = vmul.f32 %v736_v62, %v1863_v37  ;;  %v738_v7 = vadd.f32 1.0, %v1344_v32  ;;  %1371 = verf.f32 %v458_v52  ;;  %v465_v38 = vmul.f32 0.70710677, %v1968_v19  ;;  %v2010_v32 = vld [vmem:[%s1822_s29 + $0x130] sm:$0xff] }
  0x54   : > { %v1348_v10 = vpop.eup %1347  ;;  %1029 = vst [vmem:[%s1907_s16 + $0x48] sm:$0xff] %v882_v2  ;;  %v884_v36 = vmul.f32 %v737_v3, %v1866_v40  ;;  %v739_v12 = vadd.f32 1.0, %v1346_v6  ;;  %1373 = verf.f32 %v459_v57  ;;  %v310_v43 = vmul.f32 0.5, %v1912_v22  ;;  %v2017_v6 = vld [vmem:[%s1822_s29 + $0x138] sm:$0xff] }
  0x55   : > { %v1350_v14 = vpop.eup %1349  ;;  %1030 = vst [vmem:[%s1907_s16 + $0x50] sm:$0xff] %v883_v33  ;;  %v885_v37 = vmul.f32 %v738_v7, %v1868_v41  ;;  %v740_v18 = vadd.f32 1.0, %v1348_v10  ;;  %1375 = verf.f32 %v460_v63  ;;  %v466_v48 = vmul.f32 0.70710677, %v1979_v21 }
  0x56   : > { %v1352_v20 = vpop.eup %1351  ;;  %1031 = vst [vmem:[%s1907_s16 + $0x58] sm:$0xff] %v884_v36  ;;  %v886_v40 = vmul.f32 %v739_v12, %v1872_v45  ;;  %v741_v23 = vadd.f32 1.0, %v1350_v14  ;;  %1377 = verf.f32 %v461_v4  ;;  %v311_v22 = vmul.f32 0.5, %v1918_v31  ;;  %v2026_v12 = vld [vmem:[%s1822_s29 + $0x140] sm:$0xff] }
  0x57   : > { %v1354_v41 = vpop.eup %1353  ;;  %1032 = vst [vmem:[%s1907_s16 + $0x60] sm:$0xff] %v885_v37  ;;  %v887_v27 = vmul.f32 %v740_v18, %v1874_v46  ;;  %v742_v11 = vadd.f32 1.0, %v1352_v20  ;;  %1379 = verf.f32 %v462_v8  ;;  %v467_v55 = vmul.f32 0.70710677, %v1985_v24  ;;  %v2033_v18 = vld [vmem:[%s1822_s29 + $0x148] sm:$0xff] }
  0x58   : > { %v1356_v34 = vpop.eup %1355  ;;  %1033 = vst [vmem:[%s1907_s16 + $0x68] sm:$0xff] %v886_v40  ;;  %v888_v45 = vmul.f32 %v741_v23, %v1877_v49  ;;  %v743_v35 = vadd.f32 1.0, %v1354_v41  ;;  %1381 = verf.f32 %v463_v13  ;;  %v312_v61 = vmul.f32 0.5, %v1924_v39 }
  0x59   : > { %v1358_v46 = vpop.eup %1357  ;;  %1034 = vst [vmem:[%s1907_s16 + $0x70] sm:$0xff] %v887_v27  ;;  %v889_v16 = vmul.f32 %v742_v11, %v1879_v51  ;;  %v744_v42 = vadd.f32 1.0, %v1356_v34  ;;  %1383 = verf.f32 %v464_v26  ;;  %v468_v63 = vmul.f32 0.70710677, %v1994_v50  ;;  %v2040_v11 = vld [vmem:[%s1822_s29 + $0x150] sm:$0xff] }
  0x5a   : > { %v1360_v44 = vpop.eup %1359  ;;  %1035 = vst [vmem:[%s1907_s16 + $0x78] sm:$0xff] %v888_v45  ;;  %v890_v49 = vmul.f32 %v743_v35, %v1882_v54  ;;  %v745_v25 = vadd.f32 1.0, %v1358_v46  ;;  %1385 = verf.f32 %v465_v38  ;;  %v313_v39 = vmul.f32 0.5, %v1930_v47  ;;  %v2046_v38 = vld [vmem:[%s1822_s29 + $0x158] sm:$0xff] }
  0x5b   : > { %v1362_v52 = vpop.eup %1361  ;;  %1036 = vst [vmem:[%s1907_s16 + $0x80] sm:$0xff] %v889_v16  ;;  %v891_v51 = vmul.f32 %v744_v42, %v1885_v58  ;;  %v746_v28 = vadd.f32 1.0, %v1360_v44  ;;  %1387 = verf.f32 %v466_v48  ;;  %v469_v4 = vmul.f32 0.70710677, %v2001_v56  ;;  %v2053_v48 = vld [vmem:[%s1822_s29 + $0x160] sm:$0xff] }
  0x5c   : > { %v1364_v54 = vpop.eup %1363  ;;  %1037 = vst [vmem:[%s1907_s16 + $0x88] sm:$0xff] %v890_v49  ;;  %v892_v57 = vmul.f32 %v745_v25, %v1887_v60  ;;  %v747_v29 = vadd.f32 1.0, %v1362_v52  ;;  %1389 = verf.f32 %v467_v55  ;;  %v314_v8 = vmul.f32 0.5, %v1936_v53 }
  0x5d   : > { %v1366_v58 = vpop.eup %1365  ;;  %1038 = vst [vmem:[%s1907_s16 + $0x90] sm:$0xff] %v891_v51  ;;  %v893_v62 = vmul.f32 %v746_v28, %v1890_v1  ;;  %v748_v31 = vadd.f32 1.0, %v1364_v54  ;;  %1391 = verf.f32 %v468_v63  ;;  %v470_v36 = vmul.f32 0.70710677, %v2010_v32  ;;  %v2069_v63 = vld [vmem:[%s1822_s29 + $0x178] sm:$0xff] }
  0x5e   : > { %v1368_v2 = vpop.eup %1367  ;;  %1039 = vst [vmem:[%s1907_s16 + $0x98] sm:$0xff] %v892_v57  ;;  %v894_v60 = vmul.f32 %v747_v29, %v1892_v5  ;;  %v749_v3 = vadd.f32 1.0, %v1366_v58  ;;  %1393 = verf.f32 %v469_v4  ;;  %v315_v53 = vmul.f32 0.5, %v1942_v59  ;;  %v2063_v29 = vld [vmem:[%s1822_s29 + $0x170] sm:$0xff]  ;;  %v2075_v4 = vld [vmem:[%s1822_s29 + $0x180] sm:$0xff] }
  0x5f   : > { %v1370_v1 = vpop.eup %1369  ;;  %1040 = vst [vmem:[%s1907_s16 + $0xa0] sm:$0xff] %v893_v62  ;;  %v895_v33 = vmul.f32 %v748_v31, %v1900_v15  ;;  %v750_v7 = vadd.f32 1.0, %v1368_v2  ;;  %v471_v37 = vmul.f32 0.70710677, %v2017_v6  ;;  %v316_v23 = vmul.f32 0.5, %v1948_v0 }
  0x60   : > { %v1372_v5 = vpop.eup %1371  ;;  %1041 = vst [vmem:[%s1907_s16 + $0xa8] sm:$0xff] %v894_v60  ;;  %v896_v10 = vmul.f32 %v749_v3, %v1965_v17  ;;  %v751_v47 = vadd.f32 1.0, %v1370_v1  ;;  %1395 = verf.f32 %v470_v36  ;;  %v472_v59 = vmul.f32 0.70710677, %v2026_v12 }
  0x61   : > { %v1374_v13 = vpop.eup %1373  ;;  %1042 = vst [vmem:[%s1907_s16 + $0xb0] sm:$0xff] %v895_v33  ;;  %v897_v15 = vmul.f32 %v750_v7, %v1976_v30  ;;  %v752_v14 = vadd.f32 1.0, %v1372_v5  ;;  %1397 = verf.f32 %v471_v37  ;;  %v317_v35 = vmul.f32 0.5, %v1957_v9  ;;  %v2081_v7 = vld [vmem:[%s1822_s29 + $0x188] sm:$0xff]  ;;  %v2094_v37 = vld [vmem:[%s1822_s29 + $0x198] sm:$0xff] }
  0x62   : > { %v1376_v17 = vpop.eup %1375  ;;  %1043 = vst [vmem:[%s1907_s16 + $0xb8] sm:$0xff] %v896_v10  ;;  %v898_v20 = vmul.f32 %v751_v47, %v310_v43  ;;  %v753_v40 = vadd.f32 1.0, %v1374_v13  ;;  %v473_v0 = vmul.f32 0.70710677, %v2033_v18  ;;  %v318_v43 = vmul.f32 0.5, %v1968_v19  ;;  %v2058_v19 = vld [vmem:[%s1822_s29 + $0x168] sm:$0xff] }
  0x63   : > { %v1378_v26 = vpop.eup %1377  ;;  %1044 = vst [vmem:[%s1907_s16 + $0xc0] sm:$0xff] %v897_v15  ;;  %v899_v41 = vmul.f32 %v752_v14, %v311_v22  ;;  %v754_v27 = vadd.f32 1.0, %v1376_v17  ;;  %1399 = verf.f32 %v472_v59  ;;  %v474_v9 = vmul.f32 0.70710677, %v2040_v11  ;;  %v2087_v47 = vld [vmem:[%s1822_s29 + $0x190] sm:$0xff] }
  0x64   : > { %v1380_v30 = vpop.eup %1379  ;;  %1045 = vst [vmem:[%s1907_s16 + $0xc8] sm:$0xff] %v898_v20  ;;  %v900_v34 = vmul.f32 %v753_v40, %v312_v61  ;;  %v755_v45 = vadd.f32 1.0, %v1378_v26  ;;  %1401 = verf.f32 %v473_v0  ;;  %v475_v22 = vmul.f32 0.70710677, %v2046_v38  ;;  %v2100_v26 = vld [vmem:[%s1822_s29 + $0x1a0] sm:$0xff] }
  0x65   : > { %v1382_v46 = vpop.eup %1381  ;;  %1046 = vst [vmem:[%s1907_s16 + $0xd0] sm:$0xff] %v899_v41  ;;  %v901_v16 = vmul.f32 %v754_v27, %v313_v39  ;;  %v756_v42 = vadd.f32 1.0, %v1380_v30  ;;  %v319_v57 = vmul.f32 0.5, %v1979_v21  ;;  %1403 = verf.f32 %v474_v9  ;;  %v2103_v41 = vld [vmem:[%s1822_s29 + $0x1a8] sm:$0xff]  ;;  %v2121_v9 = vld [vmem:[%s1822_s29 + $0x1c0] sm:$0xff] }
  0x66   : > { %v1384_v44 = vpop.eup %1383  ;;  %1047 = vst [vmem:[%s1907_s16 + $0xd8] sm:$0xff] %v900_v34  ;;  %v902_v49 = vmul.f32 %v755_v45, %v314_v8  ;;  %v757_v25 = vadd.f32 1.0, %v1382_v46  ;;  %v320_v62 = vmul.f32 0.5, %v1985_v24  ;;  %1405 = verf.f32 %v475_v22 }
  0x67   : > { %v1386_v52 = vpop.eup %1385  ;;  %1048 = vst [vmem:[%s1907_s16 + $0xe0] sm:$0xff] %v901_v16  ;;  %v903_v51 = vmul.f32 %v756_v42, %v315_v53  ;;  %v758_v28 = vadd.f32 1.0, %v1384_v44  ;;  %v476_v31 = vmul.f32 0.70710677, %v2053_v48  ;;  %v321_v3 = vmul.f32 0.5, %v1994_v50 }
  0x68   : > { %1049 = vst [vmem:[%s1907_s16 + $0xe8] sm:$0xff] %v902_v49  ;;  %v904_v55 = vmul.f32 %v757_v25, %v316_v23  ;;  %v759_v54 = vadd.f32 1.0, %v1386_v52  ;;  %v1388_v61 = vpop.eup %1387  ;;  %v477_v39 = vmul.f32 0.70710677, %v2058_v19  ;;  %v322_v1 = vmul.f32 0.5, %v2001_v56 }
  0x69   : > { %1050 = vst [vmem:[%s1907_s16 + $0xf0] sm:$0xff] %v903_v51  ;;  %v905_v58 = vmul.f32 %v758_v28, %v317_v35  ;;  %v1390_v2 = vpop.eup %1389  ;;  %v760_v60 = vadd.f32 1.0, %v1388_v61  ;;  %1407 = verf.f32 %v476_v31  ;;  %v478_v33 = vmul.f32 0.70710677, %v2063_v29  ;;  %v2110_v35 = vld [vmem:[%s1822_s29 + $0x1b0] sm:$0xff]  ;;  %v2127_v28 = vld [vmem:[%s1822_s29 + $0x1c8] sm:$0xff] }
  0x6a   : > { %1051 = vst [vmem:[%s1907_s16 + $0xf8] sm:$0xff] %v904_v55  ;;  %v906_v21 = vmul.f32 %v759_v54, %v318_v43  ;;  %v761_v24 = vadd.f32 1.0, %v1390_v2  ;;  %v1392_v8 = vpop.eup %1391  ;;  %v323_v50 = vmul.f32 0.5, %v2010_v32  ;;  %1409 = verf.f32 %v477_v39  ;;  %v2117_v43 = vld [vmem:[%s1822_s29 + $0x1b8] sm:$0xff] }
  0x6b   : > { %1052 = vst [vmem:[%s1907_s16 + $0x100] sm:$0xff] %v905_v58  ;;  %v907_v5 = vmul.f32 %v760_v60, %v319_v57  ;;  %v479_v10 = vmul.f32 0.70710677, %v2069_v63  ;;  %v1394_v36 = vpop.eup %1393  ;;  %v762_v13 = vadd.f32 1.0, %v1392_v8  ;;  %1411 = verf.f32 %v478_v33  ;;  %v2133_v57 = vld [vmem:[%s1822_s29 + $0x1d0] sm:$0xff] }
  0x6c   : > { %1053 = vst [vmem:[%s1907_s16 + $0x108] sm:$0xff] %v906_v21  ;;  %v908_v56 = vmul.f32 %v761_v24, %v320_v62  ;;  %v480_v15 = vmul.f32 0.70710677, %v2075_v4  ;;  %v763_v14 = vadd.f32 1.0, %v1394_v36  ;;  %v324_v53 = vmul.f32 0.5, %v2017_v6  ;;  %v2140_v21 = vld [vmem:[%s1822_s29 + $0x1d8] sm:$0xff] }
  0x6d   : > { %1054 = vst [vmem:[%s1907_s16 + $0x110] sm:$0xff] %v907_v5  ;;  %1413 = verf.f32 %v479_v10  ;;  %v481_v32 = vmul.f32 0.70710677, %v2081_v7  ;;  %v1396_v17 = vpop.eup %1395  ;;  %v909_v20 = vmul.f32 %v762_v13, %v321_v3  ;;  %v325_v40 = vmul.f32 0.5, %v2026_v12 }
  0x6e   : > { %1055 = vst [vmem:[%s1907_s16 + $0x118] sm:$0xff] %v908_v56  ;;  %1415 = verf.f32 %v480_v15  ;;  %v482_v23 = vmul.f32 0.70710677, %v2087_v47  ;;  %v1398_v6 = vpop.eup %1397  ;;  %v910_v27 = vmul.f32 %v763_v14, %v322_v1  ;;  %v764_v59 = vadd.f32 1.0, %v1396_v17  ;;  %v2146_v1 = vld [vmem:[%s1822_s29 + $0x1e0] sm:$0xff] }
  0x6f   : > { %v326_v30 = vmul.f32 0.5, %v2033_v18  ;;  %1417 = verf.f32 %v481_v32  ;;  %1056 = vst [vmem:[%s1907_s16 + $0x120] sm:$0xff] %v909_v20  ;;  %v765_v34 = vadd.f32 1.0, %v1398_v6  ;;  %v327_v45 = vmul.f32 0.5, %v2040_v11  ;;  %v2159_v32 = vld [vmem:[%s1822_s29 + $0x1f0] sm:$0xff] }
  0x70   : > { %1419 = verf.f32 %v482_v23  ;;  %v483_v12 = vmul.f32 0.70710677, %v2094_v37  ;;  %v1400_v0 = vpop.eup %1399  ;;  %1057 = vst [vmem:[%s1907_s16 + $0x128] sm:$0xff] %v910_v27  ;;  %v911_v46 = vmul.f32 %v764_v59, %v323_v50  ;;  %v328_v16 = vmul.f32 0.5, %v2046_v38  ;;  %v2150_v50 = vld [vmem:[%s1822_s29 + $0x1e8] sm:$0xff]  ;;  %v2163_v23 = vld [vmem:[%s1822_s29 + $0x1f8] sm:$0xff] }
  0x71   : > { %v484_v18 = vmul.f32 0.70710677, %v2100_v26  ;;  %v485_v42 = vmul.f32 0.70710677, %v2103_v41  ;;  %v1402_v11 = vpop.eup %1401  ;;  %v912_v44 = vmul.f32 %v765_v34, %v324_v53  ;;  %v766_v49 = vadd.f32 1.0, %v1400_v0 }
  0x72   : > { %v329_v25 = vmul.f32 0.5, %v2053_v48  ;;  %1421 = verf.f32 %v483_v12  ;;  %1058 = vst [vmem:[%s1907_s16 + $0x130] sm:$0xff] %v911_v46  ;;  %v767_v52 = vadd.f32 1.0, %v1402_v11  ;;  %v330_v38 = vmul.f32 0.5, %v2058_v19  ;;  %v1404_v22 = vpop.eup %1403 }
  0x73   : > { %1423 = verf.f32 %v484_v18  ;;  %v486_v51 = vmul.f32 0.70710677, %v2110_v35  ;;  %1059 = vst [vmem:[%s1907_s16 + $0x138] sm:$0xff] %v912_v44  ;;  %v913_v55 = vmul.f32 %v766_v49, %v325_v40  ;;  %v331_v54 = vmul.f32 0.5, %v2063_v29  ;;  %v1406_v61 = vpop.eup %1405 }
  0x74   : > { %1425 = verf.f32 %v485_v42  ;;  %v487_v48 = vmul.f32 0.70710677, %v2117_v43  ;;  %v914_v19 = vmul.f32 %v767_v52, %v326_v30  ;;  %v768_v58 = vadd.f32 1.0, %v1404_v22  ;;  %v2168_v30 = vld [vmem:[%s1822_s29 + $0x200] sm:$0xff]  ;;  %v2176_v42 = vld [vmem:[%s1822_s29 + $0x208] sm:$0xff]  ;;  %v2182_v52 = vld [vmem:[%s1822_s29 + $0x210] sm:$0xff] }
  0x75   : > { %1427 = verf.f32 %v486_v51  ;;  %v488_v62 = vmul.f32 0.70710677, %v2121_v9  ;;  %1060 = vst [vmem:[%s1907_s16 + $0x140] sm:$0xff] %v913_v55  ;;  %v769_v31 = vadd.f32 1.0, %v1406_v61  ;;  %v332_v2 = vmul.f32 0.5, %v2069_v63  ;;  %v2187_v55 = vld [vmem:[%s1822_s29 + $0x218] sm:$0xff] }
  0x76   : > { %1429 = verf.f32 %v487_v48  ;;  %v489_v29 = vmul.f32 0.70710677, %v2127_v28  ;;  %v1408_v60 = vpop.eup %1407  ;;  %1061 = vst [vmem:[%s1907_s16 + $0x148] sm:$0xff] %v914_v19  ;;  %v915_v3 = vmul.f32 %v768_v58, %v327_v45  ;;  %v333_v39 = vmul.f32 0.5, %v2075_v4 }
  0x77   : > { %1431 = verf.f32 %v488_v62  ;;  %v490_v24 = vmul.f32 0.70710677, %v2133_v57  ;;  %v1410_v33 = vpop.eup %1409  ;;  %v916_v63 = vmul.f32 %v769_v31, %v328_v16  ;;  %v770_v8 = vadd.f32 1.0, %v1408_v60 }
  0x78   : > { %v334_v5 = vmul.f32 0.5, %v2081_v7  ;;  %1433 = verf.f32 %v489_v29  ;;  %v1412_v10 = vpop.eup %1411  ;;  %1062 = vst [vmem:[%s1907_s16 + $0x150] sm:$0xff] %v915_v3  ;;  %v771_v36 = vadd.f32 1.0, %v1410_v33  ;;  %v335_v4 = vmul.f32 0.5, %v2087_v47 }
  0x79   : > { %1435 = verf.f32 %v490_v24  ;;  %v491_v56 = vmul.f32 0.70710677, %v2140_v21  ;;  %1063 = vst [vmem:[%s1907_s16 + $0x158] sm:$0xff] %v916_v63  ;;  %v917_v15 = vmul.f32 %v770_v8, %v329_v25  ;;  %v772_v14 = vadd.f32 1.0, %v1412_v10 }
  0x7a   : > { %v1414_v13 = vpop.eup %1413  ;;  %v336_v7 = vmul.f32 0.5, %v2094_v37  ;;  %v492_v53 = vmul.f32 0.70710677, %v2146_v1  ;;  %v918_v20 = vmul.f32 %v771_v36, %v330_v38  ;;  %v493_v47 = vmul.f32 0.70710677, %v2150_v50 }
  0x7b   : > { %v1416_v17 = vpop.eup %1415  ;;  %v773_v40 = vadd.f32 1.0, %v1414_v13  ;;  %1437 = verf.f32 %v491_v56  ;;  %1064 = vst [vmem:[%s1907_s16 + $0x160] sm:$0xff] %v917_v15  ;;  %v919_v27 = vmul.f32 %v772_v14, %v331_v54  ;;  %v337_v37 = vmul.f32 0.5, %v2100_v26 }
  0x7c   : > { %v1418_v6 = vpop.eup %1417  ;;  %v774_v59 = vadd.f32 1.0, %v1416_v17  ;;  %1439 = verf.f32 %v492_v53  ;;  %1065 = vst [vmem:[%s1907_s16 + $0x168] sm:$0xff] %v918_v20  ;;  %v494_v0 = vmul.f32 0.70710677, %v2159_v32  ;;  %v338_v18 = vmul.f32 0.5, %v2103_v41  ;;  %v2217_v20 = vld [vmem:[%s1822_s29 + $0x240] sm:$0xff] }
  0x7d   : > { %v1420_v34 = vpop.eup %1419  ;;  %v920_v45 = vmul.f32 %v773_v40, %v332_v2  ;;  %v775_v12 = vadd.f32 1.0, %v1418_v6  ;;  %1441 = verf.f32 %v493_v47  ;;  %1066 = vst [vmem:[%s1907_s16 + $0x170] sm:$0xff] %v919_v27  ;;  %v495_v26 = vmul.f32 0.70710677, %v2163_v23  ;;  %v2196_v2 = vld [vmem:[%s1822_s29 + $0x220] sm:$0xff] }
  0x7e   : > { %v921_v46 = vmul.f32 %v774_v59, %v333_v39  ;;  %v776_v16 = vadd.f32 1.0, %v1420_v34  ;;  %v339_v49 = vmul.f32 0.5, %v2110_v35  ;;  %1443 = verf.f32 %v494_v0  ;;  %v2200_v39 = vld [vmem:[%s1822_s29 + $0x228] sm:$0xff]  ;;  %v2229_v0 = vld [vmem:[%s1822_s29 + $0x250] sm:$0xff] }
  0x7f   : > { %v1422_v11 = vpop.eup %1421  ;;  %1067 = vst [vmem:[%s1907_s16 + $0x178] sm:$0xff] %v920_v45  ;;  %v922_v44 = vmul.f32 %v775_v12, %v334_v5  ;;  %v496_v25 = vmul.f32 0.70710677, %v2168_v30  ;;  %v340_v22 = vmul.f32 0.5, %v2117_v43  ;;  %1445 = verf.f32 %v495_v26  ;;  %v2223_v59 = vld [vmem:[%s1822_s29 + $0x248] sm:$0xff] }
  0x80   : > { %v1424_v38 = vpop.eup %1423  ;;  %1068 = vst [vmem:[%s1907_s16 + $0x180] sm:$0xff] %v921_v46  ;;  %v923_v41 = vmul.f32 %v776_v16, %v335_v4  ;;  %v777_v51 = vadd.f32 1.0, %v1422_v11  ;;  %v341_v35 = vmul.f32 0.5, %v2121_v9  ;;  %v497_v61 = vmul.f32 0.70710677, %v2176_v42  ;;  %v2207_v4 = vld [vmem:[%s1822_s29 + $0x230] sm:$0xff] }
  0x81   : > { %v1426_v54 = vpop.eup %1425  ;;  %1069 = vst [vmem:[%s1907_s16 + $0x188] sm:$0xff] %v922_v44  ;;  %v778_v48 = vadd.f32 1.0, %v1424_v38  ;;  %1447 = verf.f32 %v496_v25  ;;  %v342_v31 = vmul.f32 0.5, %v2127_v28  ;;  %v498_v43 = vmul.f32 0.70710677, %v2182_v52  ;;  %v2237_v44 = vld [vmem:[%s1822_s29 + $0x258] sm:$0xff] }
  0x82   : > { %v1428_v19 = vpop.eup %1427  ;;  %1070 = vst [vmem:[%s1907_s16 + $0x190] sm:$0xff] %v923_v41  ;;  %v924_v58 = vmul.f32 %v777_v51, %v336_v7  ;;  %v779_v62 = vadd.f32 1.0, %v1426_v54  ;;  %1449 = verf.f32 %v497_v61  ;;  %v499_v9 = vmul.f32 0.70710677, %v2187_v55  ;;  %v2242_v41 = vld [vmem:[%s1822_s29 + $0x260] sm:$0xff] }
  0x83   : > { %v1430_v29 = vpop.eup %1429  ;;  %v925_v60 = vmul.f32 %v778_v48, %v337_v37  ;;  %v780_v3 = vadd.f32 1.0, %v1428_v19  ;;  %v343_v63 = vmul.f32 0.5, %v2133_v57  ;;  %1451 = verf.f32 %v498_v43  ;;  %v2212_v57 = vld [vmem:[%s1822_s29 + $0x238] sm:$0xff] }
  0x84   : > { %v1432_v24 = vpop.eup %1431  ;;  %1071 = vst [vmem:[%s1907_s16 + $0x198] sm:$0xff] %v924_v58  ;;  %v926_v33 = vmul.f32 %v779_v62, %v338_v18  ;;  %v781_v28 = vadd.f32 1.0, %v1430_v29  ;;  %1453 = verf.f32 %v499_v9  ;;  %v500_v36 = vmul.f32 0.70710677, %v2196_v2  ;;  %v2253_v62 = vld [vmem:[%s1822_s29 + $0x270] sm:$0xff] }
  0x85   : > { %v1434_v8 = vpop.eup %1433  ;;  %1072 = vst [vmem:[%s1907_s16 + $0x1a0] sm:$0xff] %v925_v60  ;;  %v927_v5 = vmul.f32 %v780_v3, %v339_v49  ;;  %v782_v10 = vadd.f32 1.0, %v1432_v24  ;;  %v501_v14 = vmul.f32 0.70710677, %v2200_v39  ;;  %v344_v17 = vmul.f32 0.5, %v2140_v21  ;;  %v2259_v60 = vld [vmem:[%s1822_s29 + $0x278] sm:$0xff] }
  0x86   : > { %v1436_v56 = vpop.eup %1435  ;;  %1073 = vst [vmem:[%s1907_s16 + $0x1a8] sm:$0xff] %v926_v33  ;;  %v928_v13 = vmul.f32 %v781_v28, %v340_v22  ;;  %v783_v15 = vadd.f32 1.0, %v1434_v8  ;;  %1455 = verf.f32 %v500_v36  ;;  %v345_v6 = vmul.f32 0.5, %v2146_v1  ;;  %v2266_v8 = vld [vmem:[%s1822_s29 + $0x280] sm:$0xff] }
  0x87   : > { %1074 = vst [vmem:[%s1907_s16 + $0x1b0] sm:$0xff] %v927_v5  ;;  %v929_v7 = vmul.f32 %v782_v10, %v341_v35  ;;  %v784_v53 = vadd.f32 1.0, %v1436_v56  ;;  %1457 = verf.f32 %v501_v14  ;;  %v502_v27 = vmul.f32 0.70710677, %v2207_v4  ;;  %v2247_v35 = vld [vmem:[%s1822_s29 + $0x268] sm:$0xff] }
  0x88   : > { %v1438_v40 = vpop.eup %1437  ;;  %1075 = vst [vmem:[%s1907_s16 + $0x1b8] sm:$0xff] %v928_v13  ;;  %v930_v47 = vmul.f32 %v783_v15, %v342_v31  ;;  %v346_v45 = vmul.f32 0.5, %v2150_v50  ;;  %v503_v12 = vmul.f32 0.70710677, %v2212_v57  ;;  %v347_v16 = vmul.f32 0.5, %v2159_v32  ;;  %v2272_v56 = vld [vmem:[%s1822_s29 + $0x288] sm:$0xff] }
  0x89   : > { %v1440_v37 = vpop.eup %1439  ;;  %1076 = vst [vmem:[%s1907_s16 + $0x1c0] sm:$0xff] %v929_v7  ;;  %v931_v34 = vmul.f32 %v784_v53, %v343_v63  ;;  %v785_v21 = vadd.f32 1.0, %v1438_v40  ;;  %1459 = verf.f32 %v502_v27  ;;  %v504_v18 = vmul.f32 0.70710677, %v2217_v20  ;;  %v2277_v7 = vld [vmem:[%s1822_s29 + $0x290] sm:$0xff] }
  0x8a   : > { %v1442_v46 = vpop.eup %1441  ;;  %1077 = vst [vmem:[%s1907_s16 + $0x1c8] sm:$0xff] %v930_v47  ;;  %v786_v1 = vadd.f32 1.0, %v1440_v37  ;;  %1461 = verf.f32 %v503_v12  ;;  %v505_v50 = vmul.f32 0.70710677, %v2223_v59  ;;  %v348_v38 = vmul.f32 0.5, %v2163_v23  ;;  %v2282_v47 = vld [vmem:[%s1822_s29 + $0x298] sm:$0xff] }
  0x8b   : > { %1078 = vst [vmem:[%s1907_s16 + $0x1d0] sm:$0xff] %v931_v34  ;;  %v932_v26 = vmul.f32 %v785_v21, %v344_v17  ;;  %v787_v11 = vadd.f32 1.0, %v1442_v46  ;;  %v1444_v49 = vpop.eup %1443  ;;  %1463 = verf.f32 %v504_v18  ;;  %v506_v32 = vmul.f32 0.70710677, %v2229_v0  ;;  %v2288_v21 = vld [vmem:[%s1822_s29 + $0x2a0] sm:$0xff]  ;;  %v2294_v46 = vld [vmem:[%s1822_s29 + $0x2a8] sm:$0xff] }
  0x8c   : > { %v933_v25 = vmul.f32 %v786_v1, %v345_v6  ;;  %v1446_v51 = vpop.eup %1445  ;;  %v788_v54 = vadd.f32 1.0, %v1444_v49  ;;  %v349_v48 = vmul.f32 0.5, %v2168_v30  ;;  %1465 = verf.f32 %v505_v50  ;;  %v2301_v49 = vld [vmem:[%s1822_s29 + $0x2b0] sm:$0xff] }
  0x8d   : > { %1079 = vst [vmem:[%s1907_s16 + $0x1d8] sm:$0xff] %v932_v26  ;;  %v934_v22 = vmul.f32 %v787_v11, %v346_v45  ;;  %v789_v23 = vadd.f32 1.0, %v1446_v51  ;;  %v350_v19 = vmul.f32 0.5, %v2176_v42  ;;  %1467 = verf.f32 %v506_v32  ;;  %v2307_v51 = vld [vmem:[%s1822_s29 + $0x2b8] sm:$0xff] }
  0x8e   : > { %v1448_v61 = vpop.eup %1447  ;;  %1080 = vst [vmem:[%s1907_s16 + $0x1e0] sm:$0xff] %v933_v25  ;;  %v507_v58 = vmul.f32 0.70710677, %v2237_v44  ;;  %v935_v31 = vmul.f32 %v788_v54, %v347_v16  ;;  %v351_v30 = vmul.f32 0.5, %v2182_v52  ;;  %v508_v29 = vmul.f32 0.70710677, %v2242_v41 }
  0x8f   : > { %1081 = vst [vmem:[%s1907_s16 + $0x1e8] sm:$0xff] %v934_v22  ;;  %v790_v43 = vadd.f32 1.0, %v1448_v61  ;;  %v1450_v3 = vpop.eup %1449  ;;  %v936_v9 = vmul.f32 %v789_v23, %v348_v38  ;;  %v352_v42 = vmul.f32 0.5, %v2187_v55  ;;  %v509_v24 = vmul.f32 0.70710677, %v2247_v35  ;;  %v2312_v23 = vld [vmem:[%s1822_s29 + $0x2c0] sm:$0xff] }
  0x90   : > { %1469 = verf.f32 %v507_v58  ;;  %v1452_v33 = vpop.eup %1451  ;;  %1082 = vst [vmem:[%s1907_s16 + $0x1f0] sm:$0xff] %v935_v31  ;;  %v791_v63 = vadd.f32 1.0, %v1450_v3  ;;  %v510_v52 = vmul.f32 0.70710677, %v2253_v62  ;;  %v353_v55 = vmul.f32 0.5, %v2196_v2 }
  0x91   : > { %v937_v28 = vmul.f32 %v790_v43, %v349_v48  ;;  %1471 = verf.f32 %v508_v29  ;;  %v1454_v5 = vpop.eup %1453  ;;  %1083 = vst [vmem:[%s1907_s16 + $0x1f8] sm:$0xff] %v936_v9  ;;  %v792_v10 = vadd.f32 1.0, %v1452_v33  ;;  %v511_v36 = vmul.f32 0.70710677, %v2259_v60 }
  0x92   : > { %1473 = verf.f32 %v509_v24  ;;  %v938_v13 = vmul.f32 %v791_v63, %v350_v19  ;;  %v793_v15 = vadd.f32 1.0, %v1454_v5  ;;  %v354_v14 = vmul.f32 0.5, %v2200_v39 }
  0x93   : > { %1084 = vst [vmem:[%s1907_s16 + $0x200] sm:$0xff] %v937_v28  ;;  %1475 = verf.f32 %v510_v52  ;;  %v1456_v53 = vpop.eup %1455  ;;  %v939_v17 = vmul.f32 %v792_v10, %v351_v30  ;;  %v355_v2 = vmul.f32 0.5, %v2207_v4  ;;  %v512_v40 = vmul.f32 0.70710677, %v2266_v8  ;;  %v2325_v28 = vld [vmem:[%s1822_s29 + $0x2d0] sm:$0xff]  ;;  %v2330_v10 = vld [vmem:[%s1822_s29 + $0x2d8] sm:$0xff] }
  0x94   : > { %1477 = verf.f32 %v511_v36  ;;  %v1458_v6 = vpop.eup %1457  ;;  %1085 = vst [vmem:[%s1907_s16 + $0x208] sm:$0xff] %v938_v13  ;;  %v940_v27 = vmul.f32 %v793_v15, %v352_v42  ;;  %v794_v37 = vadd.f32 1.0, %v1456_v53  ;;  %v356_v39 = vmul.f32 0.5, %v2212_v57 }
  0x95   : > { %v513_v34 = vmul.f32 0.70710677, %v2272_v56  ;;  %1086 = vst [vmem:[%s1907_s16 + $0x210] sm:$0xff] %v939_v17  ;;  %v795_v45 = vadd.f32 1.0, %v1458_v6  ;;  %v357_v4 = vmul.f32 0.5, %v2217_v20  ;;  %1479 = verf.f32 %v512_v40 }
  0x96   : > { %v514_v12 = vmul.f32 0.70710677, %v2277_v7  ;;  %v1460_v1 = vpop.eup %1459  ;;  %1087 = vst [vmem:[%s1907_s16 + $0x218] sm:$0xff] %v940_v27  ;;  %v941_v16 = vmul.f32 %v794_v37, %v353_v55  ;;  %v358_v57 = vmul.f32 0.5, %v2223_v59  ;;  %v515_v18 = vmul.f32 0.70710677, %v2282_v47 }
  0x97   : > { %1481 = verf.f32 %v513_v34  ;;  %v1462_v26 = vpop.eup %1461  ;;  %v942_v11 = vmul.f32 %v795_v45, %v354_v14  ;;  %v796_v50 = vadd.f32 1.0, %v1460_v1  ;;  %v516_v20 = vmul.f32 0.70710677, %v2288_v21  ;;  %v2343_v37 = vld [vmem:[%s1822_s29 + $0x2e8] sm:$0xff]  ;;  %v2348_v45 = vld [vmem:[%s1822_s29 + $0x2f0] sm:$0xff] }
  0x98   : > { %1483 = verf.f32 %v514_v12  ;;  %v1464_v25 = vpop.eup %1463  ;;  %1088 = vst [vmem:[%s1907_s16 + $0x220] sm:$0xff] %v941_v16  ;;  %v797_v38 = vadd.f32 1.0, %v1462_v26  ;;  %v359_v32 = vmul.f32 0.5, %v2229_v0  ;;  %v517_v59 = vmul.f32 0.70710677, %v2294_v46 }
  0x99   : > { %1485 = verf.f32 %v515_v18  ;;  %v1466_v22 = vpop.eup %1465  ;;  %1089 = vst [vmem:[%s1907_s16 + $0x228] sm:$0xff] %v942_v11  ;;  %v943_v54 = vmul.f32 %v796_v50, %v355_v2  ;;  %v798_v48 = vadd.f32 1.0, %v1464_v25  ;;  %v360_v61 = vmul.f32 0.5, %v2237_v44  ;;  %v2319_v44 = vld [vmem:[%s1822_s29 + $0x2c8] sm:$0xff]  ;;  %v2339_v2 = vld [vmem:[%s1822_s29 + $0x2e0] sm:$0xff] }
  0x9a   : > { %1487 = verf.f32 %v516_v20  ;;  %v1468_v19 = vpop.eup %1467  ;;  %v944_v58 = vmul.f32 %v797_v38, %v356_v39  ;;  %v799_v0 = vadd.f32 1.0, %v1466_v22  ;;  %v518_v31 = vmul.f32 0.70710677, %v2301_v49 }
  0x9b   : > { %1489 = verf.f32 %v517_v59  ;;  %1090 = vst [vmem:[%s1907_s16 + $0x230] sm:$0xff] %v943_v54  ;;  %v945_v43 = vmul.f32 %v798_v48, %v357_v4  ;;  %v800_v30 = vadd.f32 1.0, %v1468_v19  ;;  %v361_v29 = vmul.f32 0.5, %v2242_v41  ;;  %v2368_v48 = vld [vmem:[%s1822_s29 + $0x308] sm:$0xff] }
  0x9c   : > { %v519_v3 = vmul.f32 0.70710677, %v2307_v51  ;;  %1091 = vst [vmem:[%s1907_s16 + $0x238] sm:$0xff] %v944_v58  ;;  %v946_v42 = vmul.f32 %v799_v0, %v358_v57  ;;  %v362_v24 = vmul.f32 0.5, %v2247_v35  ;;  %1491 = verf.f32 %v518_v31  ;;  %v2354_v57 = vld [vmem:[%s1822_s29 + $0x2f8] sm:$0xff]  ;;  %v2372_v0 = vld [vmem:[%s1822_s29 + $0x310] sm:$0xff] }
  0x9d   : > { %v1470_v9 = vpop.eup %1469  ;;  %v520_v33 = vmul.f32 0.70710677, %v2312_v23  ;;  %1092 = vst [vmem:[%s1907_s16 + $0x240] sm:$0xff] %v945_v43  ;;  %v947_v41 = vmul.f32 %v800_v30, %v359_v32  ;;  %v363_v5 = vmul.f32 0.5, %v2253_v62  ;;  %v364_v35 = vmul.f32 0.5, %v2259_v60  ;;  %v2363_v32 = vld [vmem:[%s1822_s29 + $0x300] sm:$0xff] }
  0x9e   : > { %v1472_v63 = vpop.eup %1471  ;;  %v801_v52 = vadd.f32 1.0, %v1470_v9  ;;  %1493 = verf.f32 %v519_v3  ;;  %1093 = vst [vmem:[%s1907_s16 + $0x248] sm:$0xff] %v946_v42  ;;  %v521_v13 = vmul.f32 0.70710677, %v2319_v44  ;;  %v365_v62 = vmul.f32 0.5, %v2266_v8 }
  0x9f   : > { %v1474_v55 = vpop.eup %1473  ;;  %v802_v36 = vadd.f32 1.0, %v1472_v63  ;;  %1495 = verf.f32 %v520_v33  ;;  %1094 = vst [vmem:[%s1907_s16 + $0x250] sm:$0xff] %v947_v41  ;;  %v522_v17 = vmul.f32 0.70710677, %v2325_v28  ;;  %v523_v60 = vmul.f32 0.70710677, %v2330_v10 }
  0xa0   : > { %v1476_v15 = vpop.eup %1475  ;;  %v948_v14 = vmul.f32 %v801_v52, %v360_v61  ;;  %v803_v53 = vadd.f32 1.0, %v1474_v55  ;;  %1497 = verf.f32 %v521_v13  ;;  %v366_v8 = vmul.f32 0.5, %v2272_v56  ;;  %v2391_v13 = vld [vmem:[%s1822_s29 + $0x328] sm:$0xff] }
  0xa1   : > { %v1478_v40 = vpop.eup %1477  ;;  %v949_v6 = vmul.f32 %v802_v36, %v361_v29  ;;  %v804_v27 = vadd.f32 1.0, %v1476_v15  ;;  %1499 = verf.f32 %v522_v17  ;;  %v367_v1 = vmul.f32 0.5, %v2277_v7 }
  0xa2   : > { %1095 = vst [vmem:[%s1907_s16 + $0x258] sm:$0xff] %v948_v14  ;;  %v950_v39 = vmul.f32 %v803_v53, %v362_v24  ;;  %v805_v34 = vadd.f32 1.0, %v1478_v40  ;;  %v1480_v4 = vpop.eup %1479  ;;  %1501 = verf.f32 %v523_v60  ;;  %v524_v16 = vmul.f32 0.70710677, %v2339_v2  ;;  %v2380_v24 = vld [vmem:[%s1822_s29 + $0x318] sm:$0xff] }
  0xa3   : > { %1096 = vst [vmem:[%s1907_s16 + $0x260] sm:$0xff] %v949_v6  ;;  %v951_v12 = vmul.f32 %v804_v27, %v363_v5  ;;  %v806_v56 = vadd.f32 1.0, %v1480_v4  ;;  %v368_v11 = vmul.f32 0.5, %v2282_v47  ;;  %v525_v50 = vmul.f32 0.70710677, %v2343_v37  ;;  %v2386_v5 = vld [vmem:[%s1822_s29 + $0x320] sm:$0xff] }
  0xa4   : > { %v1482_v18 = vpop.eup %1481  ;;  %1097 = vst [vmem:[%s1907_s16 + $0x268] sm:$0xff] %v950_v39  ;;  %v952_v26 = vmul.f32 %v805_v34, %v364_v35  ;;  %v369_v7 = vmul.f32 0.5, %v2288_v21  ;;  %1503 = verf.f32 %v524_v16  ;;  %v526_v38 = vmul.f32 0.70710677, %v2348_v45  ;;  %v2403_v27 = vld [vmem:[%s1822_s29 + $0x338] sm:$0xff] }
  0xa5   : > { %v1484_v20 = vpop.eup %1483  ;;  %1098 = vst [vmem:[%s1907_s16 + $0x270] sm:$0xff] %v951_v12  ;;  %v807_v25 = vadd.f32 1.0, %v1482_v18  ;;  %v953_v22 = vmul.f32 %v806_v56, %v365_v62  ;;  %1505 = verf.f32 %v525_v50  ;;  %v527_v47 = vmul.f32 0.70710677, %v2354_v57  ;;  %v2397_v62 = vld [vmem:[%s1822_s29 + $0x330] sm:$0xff]  ;;  %v2416_v56 = vld [vmem:[%s1822_s29 + $0x348] sm:$0xff] }
  0xa6   : > { %v1486_v59 = vpop.eup %1485  ;;  %1099 = vst [vmem:[%s1907_s16 + $0x278] sm:$0xff] %v952_v26  ;;  %v808_v54 = vadd.f32 1.0, %v1484_v20  ;;  %v370_v58 = vmul.f32 0.5, %v2294_v46  ;;  %1507 = verf.f32 %v526_v38  ;;  %v528_v29 = vmul.f32 0.70710677, %v2363_v32 }
  0xa7   : > { %v1488_v61 = vpop.eup %1487  ;;  %v954_v19 = vmul.f32 %v807_v25, %v366_v8  ;;  %v809_v21 = vadd.f32 1.0, %v1486_v59  ;;  %1100 = vst [vmem:[%s1907_s16 + $0x280] sm:$0xff] %v953_v22  ;;  %1509 = verf.f32 %v527_v47  ;;  %v371_v42 = vmul.f32 0.5, %v2301_v49  ;;  %v2421_v25 = vld [vmem:[%s1822_s29 + $0x350] sm:$0xff]  ;;  %v2426_v22 = vld [vmem:[%s1822_s29 + $0x358] sm:$0xff] }
  0xa8   : > { %v1490_v31 = vpop.eup %1489  ;;  %v955_v43 = vmul.f32 %v808_v54, %v367_v1  ;;  %v810_v30 = vadd.f32 1.0, %v1488_v61  ;;  %v529_v46 = vmul.f32 0.70710677, %v2368_v48  ;;  %v372_v41 = vmul.f32 0.5, %v2307_v51  ;;  %v2410_v1 = vld [vmem:[%s1822_s29 + $0x340] sm:$0xff] }
  0xa9   : > { %1101 = vst [vmem:[%s1907_s16 + $0x288] sm:$0xff] %v954_v19  ;;  %v956_v3 = vmul.f32 %v809_v21, %v368_v11  ;;  %v811_v9 = vadd.f32 1.0, %v1490_v31  ;;  %v1492_v33 = vpop.eup %1491  ;;  %1511 = verf.f32 %v528_v29  ;;  %v530_v52 = vmul.f32 0.70710677, %v2372_v0 }
  0xaa   : > { %1102 = vst [vmem:[%s1907_s16 + $0x290] sm:$0xff] %v955_v43  ;;  %v957_v63 = vmul.f32 %v810_v30, %v369_v7  ;;  %v812_v36 = vadd.f32 1.0, %v1492_v33  ;;  %v373_v35 = vmul.f32 0.5, %v2312_v23  ;;  %1513 = verf.f32 %v529_v46  ;;  %v2435_v43 = vld [vmem:[%s1822_s29 + $0x360] sm:$0xff]  ;;  %v2444_v33 = vld [vmem:[%s1822_s29 + $0x370] sm:$0xff] }
  0xab   : > { %v1494_v55 = vpop.eup %1493  ;;  %1103 = vst [vmem:[%s1907_s16 + $0x298] sm:$0xff] %v956_v3  ;;  %v958_v49 = vmul.f32 %v811_v9, %v370_v58  ;;  %v374_v14 = vmul.f32 0.5, %v2319_v44  ;;  %1515 = verf.f32 %v530_v52  ;;  %v531_v53 = vmul.f32 0.70710677, %v2380_v24  ;;  %v2440_v9 = vld [vmem:[%s1822_s29 + $0x368] sm:$0xff] }
  0xac   : > { %v1496_v15 = vpop.eup %1495  ;;  %1104 = vst [vmem:[%s1907_s16 + $0x2a0] sm:$0xff] %v957_v63  ;;  %v813_v51 = vadd.f32 1.0, %v1494_v55  ;;  %v959_v17 = vmul.f32 %v812_v36, %v371_v42  ;;  %v375_v23 = vmul.f32 0.5, %v2325_v28  ;;  %v532_v6 = vmul.f32 0.70710677, %v2386_v5 }
  0xad   : > { %1105 = vst [vmem:[%s1907_s16 + $0x2a8] sm:$0xff] %v958_v49  ;;  %v814_v40 = vadd.f32 1.0, %v1496_v15  ;;  %v1498_v60 = vpop.eup %1497  ;;  %v376_v44 = vmul.f32 0.5, %v2330_v10  ;;  %1517 = verf.f32 %v531_v53  ;;  %v533_v34 = vmul.f32 0.70710677, %v2391_v13  ;;  %v2450_v49 = vld [vmem:[%s1822_s29 + $0x378] sm:$0xff] }
  0xae   : > { %v960_v39 = vmul.f32 %v813_v51, %v372_v41  ;;  %v1500_v8 = vpop.eup %1499  ;;  %1106 = vst [vmem:[%s1907_s16 + $0x2b0] sm:$0xff] %v959_v17  ;;  %v815_v12 = vadd.f32 1.0, %v1498_v60  ;;  %1519 = verf.f32 %v532_v6  ;;  %v534_v28 = vmul.f32 0.70710677, %v2397_v62  ;;  %v2464_v60 = vld [vmem:[%s1822_s29 + $0x388] sm:$0xff] }
  0xaf   : > { %v961_v4 = vmul.f32 %v814_v40, %v373_v35  ;;  %v1502_v16 = vpop.eup %1501  ;;  %v816_v18 = vadd.f32 1.0, %v1500_v8  ;;  %v377_v10 = vmul.f32 0.5, %v2339_v2  ;;  %1521 = verf.f32 %v533_v34  ;;  %v2469_v8 = vld [vmem:[%s1822_s29 + $0x390] sm:$0xff] }
  0xb0   : > { %1107 = vst [vmem:[%s1907_s16 + $0x2b8] sm:$0xff] %v960_v39  ;;  %v535_v26 = vmul.f32 0.70710677, %v2403_v27  ;;  %v962_v11 = vmul.f32 %v815_v12, %v374_v14  ;;  %v817_v50 = vadd.f32 1.0, %v1502_v16  ;;  %v378_v20 = vmul.f32 0.5, %v2343_v37  ;;  %v2456_v14 = vld [vmem:[%s1822_s29 + $0x380] sm:$0xff] }
  0xb1   : > { %1108 = vst [vmem:[%s1907_s16 + $0x2c0] sm:$0xff] %v961_v4  ;;  %1523 = verf.f32 %v534_v28  ;;  %v1504_v7 = vpop.eup %1503  ;;  %v963_v38 = vmul.f32 %v816_v18, %v375_v23  ;;  %v379_v59 = vmul.f32 0.5, %v2348_v45  ;;  %v536_v2 = vmul.f32 0.70710677, %v2410_v1  ;;  %v2474_v18 = vld [vmem:[%s1822_s29 + $0x398] sm:$0xff] }
  0xb2   : > { %1525 = verf.f32 %v535_v26  ;;  %v1506_v54 = vpop.eup %1505  ;;  %1109 = vst [vmem:[%s1907_s16 + $0x2c8] sm:$0xff] %v962_v11  ;;  %v964_v47 = vmul.f32 %v817_v50, %v376_v44  ;;  %v818_v61 = vadd.f32 1.0, %v1504_v7  ;;  %v380_v37 = vmul.f32 0.5, %v2354_v57 }
  0xb3   : > { %v537_v19 = vmul.f32 0.70710677, %v2416_v56  ;;  %v1508_v21 = vpop.eup %1507  ;;  %1110 = vst [vmem:[%s1907_s16 + $0x2d0] sm:$0xff] %v963_v38  ;;  %v819_v58 = vadd.f32 1.0, %v1506_v54  ;;  %v381_v45 = vmul.f32 0.5, %v2363_v32  ;;  %1527 = verf.f32 %v536_v2 }
  0xb4   : > { %v538_v31 = vmul.f32 0.70710677, %v2421_v25  ;;  %v1510_v30 = vpop.eup %1509  ;;  %1111 = vst [vmem:[%s1907_s16 + $0x2d8] sm:$0xff] %v964_v47  ;;  %v965_v29 = vmul.f32 %v818_v61, %v377_v10  ;;  %v820_v3 = vadd.f32 1.0, %v1508_v21  ;;  %v539_v57 = vmul.f32 0.70710677, %v2426_v22 }
  0xb5   : > { %1529 = verf.f32 %v537_v19  ;;  %v966_v42 = vmul.f32 %v819_v58, %v378_v20  ;;  %v821_v46 = vadd.f32 1.0, %v1510_v30  ;;  %v382_v32 = vmul.f32 0.5, %v2368_v48  ;;  %v2487_v61 = vld [vmem:[%s1822_s29 + $0x3a8] sm:$0xff]  ;;  %v2492_v21 = vld [vmem:[%s1822_s29 + $0x3b0] sm:$0xff] }
  0xb6   : > { %1531 = verf.f32 %v538_v31  ;;  %v1512_v63 = vpop.eup %1511  ;;  %1112 = vst [vmem:[%s1907_s16 + $0x2e0] sm:$0xff] %v965_v29  ;;  %v967_v41 = vmul.f32 %v820_v3, %v379_v59  ;;  %v383_v52 = vmul.f32 0.5, %v2372_v0  ;;  %v540_v55 = vmul.f32 0.70710677, %v2435_v43  ;;  %v2483_v59 = vld [vmem:[%s1822_s29 + $0x3a0] sm:$0xff]  ;;  %v2498_v29 = vld [vmem:[%s1822_s29 + $0x3b8] sm:$0xff] }
  0xb7   : > { %1533 = verf.f32 %v539_v57  ;;  %v1514_v36 = vpop.eup %1513  ;;  %1113 = vst [vmem:[%s1907_s16 + $0x2e8] sm:$0xff] %v966_v42  ;;  %v968_v35 = vmul.f32 %v821_v46, %v380_v37  ;;  %v822_v48 = vadd.f32 1.0, %v1512_v63  ;;  %v384_v15 = vmul.f32 0.5, %v2380_v24 }
  0xb8   : > { %v541_v51 = vmul.f32 0.70710677, %v2440_v9  ;;  %v1516_v53 = vpop.eup %1515  ;;  %1114 = vst [vmem:[%s1907_s16 + $0x2f0] sm:$0xff] %v967_v41  ;;  %v823_v0 = vadd.f32 1.0, %v1514_v36  ;;  %v385_v17 = vmul.f32 0.5, %v2386_v5  ;;  %1535 = verf.f32 %v540_v55 }
  0xb9   : > { %v542_v40 = vmul.f32 0.70710677, %v2444_v33  ;;  %1115 = vst [vmem:[%s1907_s16 + $0x2f8] sm:$0xff] %v968_v35  ;;  %v969_v23 = vmul.f32 %v822_v48, %v381_v45  ;;  %v824_v6 = vadd.f32 1.0, %v1516_v53  ;;  %v543_v24 = vmul.f32 0.70710677, %v2450_v49 }
  0xba   : > { %1537 = verf.f32 %v541_v51  ;;  %v1518_v39 = vpop.eup %1517  ;;  %v970_v44 = vmul.f32 %v823_v0, %v382_v32  ;;  %v386_v34 = vmul.f32 0.5, %v2391_v13  ;;  %v544_v5 = vmul.f32 0.70710677, %v2456_v14  ;;  %v2512_v48 = vld [vmem:[%s1822_s29 + $0x3c8] sm:$0xff]  ;;  %v2516_v53 = vld [vmem:[%s1822_s29 + $0x3d0] sm:$0xff] }
  0xbb   : > { %1539 = verf.f32 %v542_v40  ;;  %v1520_v4 = vpop.eup %1519  ;;  %1116 = vst [vmem:[%s1907_s16 + $0x300] sm:$0xff] %v969_v23  ;;  %v971_v12 = vmul.f32 %v824_v6, %v383_v52  ;;  %v825_v28 = vadd.f32 1.0, %v1518_v39  ;;  %v387_v16 = vmul.f32 0.5, %v2397_v62  ;;  %v2507_v52 = vld [vmem:[%s1822_s29 + $0x3c0] sm:$0xff]  ;;  %v2522_v6 = vld [vmem:[%s1822_s29 + $0x3d8] sm:$0xff] }
  0xbc   : > { %1541 = verf.f32 %v543_v24  ;;  %v1522_v10 = vpop.eup %1521  ;;  %1117 = vst [vmem:[%s1907_s16 + $0x308] sm:$0xff] %v970_v44  ;;  %v826_v26 = vadd.f32 1.0, %v1520_v4  ;;  %v388_v13 = vmul.f32 0.5, %v2403_v27  ;;  %v545_v11 = vmul.f32 0.70710677, %v2464_v60 }
  0xbd   : > { %1543 = verf.f32 %v544_v5  ;;  %1118 = vst [vmem:[%s1907_s16 + $0x310] sm:$0xff] %v971_v12  ;;  %v972_v20 = vmul.f32 %v825_v28, %v384_v15  ;;  %v827_v7 = vadd.f32 1.0, %v1522_v10  ;;  %v389_v62 = vmul.f32 0.5, %v2410_v1  ;;  %v2531_v28 = vld [vmem:[%s1822_s29 + $0x3e0] sm:$0xff] }
  0xbe   : > { %v1524_v50 = vpop.eup %1523  ;;  %v546_v38 = vmul.f32 0.70710677, %v2469_v8  ;;  %v973_v54 = vmul.f32 %v826_v26, %v385_v17  ;;  %1545 = verf.f32 %v545_v11  ;;  %v547_v27 = vmul.f32 0.70710677, %v2474_v18 }
  0xbf   : > { %v1526_v2 = vpop.eup %1525  ;;  %v828_v47 = vadd.f32 1.0, %v1524_v50  ;;  %1119 = vst [vmem:[%s1907_s16 + $0x318] sm:$0xff] %v972_v20  ;;  %v974_v37 = vmul.f32 %v827_v7, %v386_v34  ;;  %v390_v1 = vmul.f32 0.5, %v2416_v56  ;;  %v391_v31 = vmul.f32 0.5, %v2421_v25  ;;  %v2540_v7 = vld [vmem:[%s1822_s29 + $0x3f0] sm:$0xff] }
  0xc0   : > { %v829_v19 = vadd.f32 1.0, %v1526_v2  ;;  %1547 = verf.f32 %v546_v38  ;;  %v1528_v58 = vpop.eup %1527  ;;  %1120 = vst [vmem:[%s1907_s16 + $0x320] sm:$0xff] %v973_v54  ;;  %v548_v30 = vmul.f32 0.70710677, %v2483_v59  ;;  %v392_v42 = vmul.f32 0.5, %v2426_v22  ;;  %v2545_v54 = vld [vmem:[%s1822_s29 + $0x3f8] sm:$0xff] }
  0xc1   : > { %v975_v45 = vmul.f32 %v828_v47, %v387_v16  ;;  %1549 = verf.f32 %v547_v27  ;;  %1121 = vst [vmem:[%s1907_s16 + $0x328] sm:$0xff] %v974_v37  ;;  %v830_v56 = vadd.f32 1.0, %v1528_v58  ;;  %v549_v46 = vmul.f32 0.70710677, %v2487_v61 }
  0xc2   : > { %v1530_v3 = vpop.eup %1529  ;;  %v976_v57 = vmul.f32 %v829_v19, %v388_v13  ;;  %v393_v25 = vmul.f32 0.5, %v2435_v43  ;;  %1551 = verf.f32 %v548_v30  ;;  %v550_v41 = vmul.f32 0.70710677, %v2492_v21  ;;  %v2536_v13 = vld [vmem:[%s1822_s29 + $0x3e8] sm:$0xff]  ;;  %v2554_v30 = vld [vmem:[%s1822_s29 + $0x400] sm:$0xff] }
  0xc3   : > { %v1532_v32 = vpop.eup %1531  ;;  %1122 = vst [vmem:[%s1907_s16 + $0x330] sm:$0xff] %v975_v45  ;;  %v831_v63 = vadd.f32 1.0, %v1530_v3  ;;  %v977_v36 = vmul.f32 %v830_v56, %v389_v62  ;;  %1553 = verf.f32 %v549_v46  ;;  %v551_v22 = vmul.f32 0.70710677, %v2498_v29 }
  0xc4   : > { %v1534_v55 = vpop.eup %1533  ;;  %1123 = vst [vmem:[%s1907_s16 + $0x338] sm:$0xff] %v976_v57  ;;  %v832_v35 = vadd.f32 1.0, %v1532_v32  ;;  %v394_v43 = vmul.f32 0.5, %v2440_v9  ;;  %1555 = verf.f32 %v550_v41  ;;  %v395_v40 = vmul.f32 0.5, %v2444_v33  ;;  %v2564_v32 = vld [vmem:[%s1822_s29 + $0x410] sm:$0xff] }
  0xc5   : > { %v978_v15 = vmul.f32 %v831_v63, %v390_v1  ;;  %v833_v51 = vadd.f32 1.0, %v1534_v55  ;;  %v1536_v0 = vpop.eup %1535  ;;  %1124 = vst [vmem:[%s1907_s16 + $0x340] sm:$0xff] %v977_v36  ;;  %1557 = verf.f32 %v551_v22  ;;  %v552_v23 = vmul.f32 0.70710677, %v2507_v52  ;;  %v2569_v36 = vld [vmem:[%s1822_s29 + $0x418] sm:$0xff] }
  0xc6   : > { %v979_v17 = vmul.f32 %v832_v35, %v391_v31  ;;  %v834_v9 = vadd.f32 1.0, %v1536_v0  ;;  %v396_v44 = vmul.f32 0.5, %v2450_v49  ;;  %v553_v34 = vmul.f32 0.70710677, %v2512_v48 }
  0xc7   : > { %v1538_v24 = vpop.eup %1537  ;;  %1125 = vst [vmem:[%s1907_s16 + $0x348] sm:$0xff] %v978_v15  ;;  %v980_v39 = vmul.f32 %v833_v51, %v392_v42  ;;  %v397_v33 = vmul.f32 0.5, %v2456_v14  ;;  %1559 = verf.f32 %v552_v23  ;;  %v554_v12 = vmul.f32 0.70710677, %v2516_v53 }
  0xc8   : > { %v1540_v5 = vpop.eup %1539  ;;  %1126 = vst [vmem:[%s1907_s16 + $0x350] sm:$0xff] %v979_v17  ;;  %v835_v4 = vadd.f32 1.0, %v1538_v24  ;;  %v981_v10 = vmul.f32 %v834_v9, %v393_v25  ;;  %1561 = verf.f32 %v553_v34  ;;  %v555_v49 = vmul.f32 0.70710677, %v2522_v6  ;;  %v2583_v9 = vld [vmem:[%s1822_s29 + $0x428] sm:$0xff] }
  0xc9   : > { %v1542_v16 = vpop.eup %1541  ;;  %1127 = vst [vmem:[%s1907_s16 + $0x358] sm:$0xff] %v980_v39  ;;  %v836_v26 = vadd.f32 1.0, %v1540_v5  ;;  %v398_v20 = vmul.f32 0.5, %v2464_v60  ;;  %1563 = verf.f32 %v554_v12  ;;  %v556_v2 = vmul.f32 0.70710677, %v2531_v28  ;;  %v2587_v5 = vld [vmem:[%s1822_s29 + $0x430] sm:$0xff] }
  0xca   : > { %v1544_v11 = vpop.eup %1543  ;;  %v982_v14 = vmul.f32 %v835_v4, %v394_v43  ;;  %v837_v50 = vadd.f32 1.0, %v1542_v16  ;;  %1128 = vst [vmem:[%s1907_s16 + $0x360] sm:$0xff] %v981_v10  ;;  %1565 = verf.f32 %v555_v49  ;;  %v399_v60 = vmul.f32 0.5, %v2469_v8  ;;  %v2593_v10 = vld [vmem:[%s1822_s29 + $0x438] sm:$0xff] }
  0xcb   : > { %v983_v62 = vmul.f32 %v836_v26, %v395_v40  ;;  %v838_v38 = vadd.f32 1.0, %v1544_v11  ;;  %v1546_v47 = vpop.eup %1545  ;;  %v400_v37 = vmul.f32 0.5, %v2474_v18  ;;  %v557_v19 = vmul.f32 0.70710677, %v2536_v13  ;;  %v2559_v18 = vld [vmem:[%s1822_s29 + $0x408] sm:$0xff]  ;;  %v2578_v40 = vld [vmem:[%s1822_s29 + $0x420] sm:$0xff] }
  0xcc   : > { %1129 = vst [vmem:[%s1907_s16 + $0x368] sm:$0xff] %v982_v14  ;;  %v984_v27 = vmul.f32 %v837_v50, %v396_v44  ;;  %v839_v45 = vadd.f32 1.0, %v1546_v47  ;;  %1567 = verf.f32 %v556_v2  ;;  %v558_v31 = vmul.f32 0.70710677, %v2540_v7 }
  0xcd   : > { %v1548_v1 = vpop.eup %1547  ;;  %1130 = vst [vmem:[%s1907_s16 + $0x370] sm:$0xff] %v983_v62  ;;  %v985_v58 = vmul.f32 %v838_v38, %v397_v33  ;;  %1569 = verf.f32 %v557_v19  ;;  %v559_v8 = vmul.f32 0.70710677, %v2545_v54  ;;  %v401_v46 = vmul.f32 0.5, %v2483_v59  ;;  %v2602_v38 = vld [vmem:[%s1822_s29 + $0x440] sm:$0xff] }
  0xce   : > { %v1550_v3 = vpop.eup %1549  ;;  %1131 = vst [vmem:[%s1907_s16 + $0x378] sm:$0xff] %v984_v27  ;;  %v840_v57 = vadd.f32 1.0, %v1548_v1  ;;  %v986_v56 = vmul.f32 %v839_v45, %v398_v20  ;;  %1571 = verf.f32 %v558_v31  ;;  %v402_v41 = vmul.f32 0.5, %v2487_v61  ;;  %v2611_v1 = vld [vmem:[%s1822_s29 + $0x450] sm:$0xff] }
  0xcf   : > { %1132 = vst [vmem:[%s1907_s16 + $0x380] sm:$0xff] %v985_v58  ;;  %v841_v42 = vadd.f32 1.0, %v1550_v3  ;;  %v1552_v63 = vpop.eup %1551  ;;  %1573 = verf.f32 %v559_v8  ;;  %v560_v55 = vmul.f32 0.70710677, %v2554_v30  ;;  %v403_v59 = vmul.f32 0.5, %v2492_v21 }
  0xd0   : > { %v987_v25 = vmul.f32 %v840_v57, %v399_v60  ;;  %v1554_v35 = vpop.eup %1553  ;;  %1133 = vst [vmem:[%s1907_s16 + $0x388] sm:$0xff] %v986_v56  ;;  %v842_v15 = vadd.f32 1.0, %v1552_v63  ;;  %v561_v51 = vmul.f32 0.70710677, %v2559_v18  ;;  %v404_v61 = vmul.f32 0.5, %v2498_v29  ;;  %v2607_v60 = vld [vmem:[%s1822_s29 + $0x448] sm:$0xff] }
  0xd1   : > { %v988_v22 = vmul.f32 %v841_v42, %v400_v37  ;;  %v1556_v43 = vpop.eup %1555  ;;  %v843_v0 = vadd.f32 1.0, %v1554_v35  ;;  %1575 = verf.f32 %v560_v55  ;;  %v562_v17 = vmul.f32 0.70710677, %v2564_v32  ;;  %v2617_v57 = vld [vmem:[%s1822_s29 + $0x458] sm:$0xff]  ;;  %v2626_v55 = vld [vmem:[%s1822_s29 + $0x460] sm:$0xff] }
  0xd2   : > { %1134 = vst [vmem:[%s1907_s16 + $0x390] sm:$0xff] %v987_v25  ;;  %v1558_v23 = vpop.eup %1557  ;;  %v989_v24 = vmul.f32 %v842_v15, %v401_v46  ;;  %v844_v39 = vadd.f32 1.0, %v1556_v43  ;;  %1577 = verf.f32 %v561_v51  ;;  %v563_v21 = vmul.f32 0.70710677, %v2569_v36 }
  0xd3   : > { %1135 = vst [vmem:[%s1907_s16 + $0x398] sm:$0xff] %v988_v22  ;;  %v990_v44 = vmul.f32 %v843_v0, %v402_v41  ;;  %v845_v34 = vadd.f32 1.0, %v1558_v23  ;;  %v405_v29 = vmul.f32 0.5, %v2507_v52  ;;  %1579 = verf.f32 %v562_v17  ;;  %v2635_v0 = vld [vmem:[%s1822_s29 + $0x470] sm:$0xff] }
  0xd4   : > { %v1560_v4 = vpop.eup %1559  ;;  %1136 = vst [vmem:[%s1907_s16 + $0x3a0] sm:$0xff] %v989_v24  ;;  %v991_v33 = vmul.f32 %v844_v39, %v403_v59  ;;  %v406_v12 = vmul.f32 0.5, %v2512_v48  ;;  %1581 = verf.f32 %v563_v21  ;;  %v564_v16 = vmul.f32 0.70710677, %v2578_v40  ;;  %v2631_v59 = vld [vmem:[%s1822_s29 + $0x468] sm:$0xff]  ;;  %v2641_v39 = vld [vmem:[%s1822_s29 + $0x478] sm:$0xff] }
  0xd5   : > { %v1562_v26 = vpop.eup %1561  ;;  %1137 = vst [vmem:[%s1907_s16 + $0x3a8] sm:$0xff] %v990_v44  ;;  %v992_v49 = vmul.f32 %v845_v34, %v404_v61  ;;  %v846_v52 = vadd.f32 1.0, %v1560_v4  ;;  %v407_v11 = vmul.f32 0.5, %v2516_v53  ;;  %v565_v14 = vmul.f32 0.70710677, %v2583_v9 }
  0xd6   : > { %v1564_v50 = vpop.eup %1563  ;;  %1138 = vst [vmem:[%s1907_s16 + $0x3b0] sm:$0xff] %v991_v33  ;;  %v847_v20 = vadd.f32 1.0, %v1562_v26  ;;  %v408_v48 = vmul.f32 0.5, %v2522_v6  ;;  %1583 = verf.f32 %v564_v16  ;;  %v566_v62 = vmul.f32 0.70710677, %v2587_v5  ;;  %v2650_v16 = vld [vmem:[%s1822_s29 + $0x480] sm:$0xff] }
  0xd7   : > { %v1566_v2 = vpop.eup %1565  ;;  %1139 = vst [vmem:[%s1907_s16 + $0x3b8] sm:$0xff] %v992_v49  ;;  %v993_v47 = vmul.f32 %v846_v52, %v405_v29  ;;  %v848_v27 = vadd.f32 1.0, %v1564_v50  ;;  %1585 = verf.f32 %v565_v14  ;;  %v567_v53 = vmul.f32 0.70710677, %v2593_v10 }
  0xd8   : > { %v994_v37 = vmul.f32 %v847_v20, %v406_v12  ;;  %v849_v19 = vadd.f32 1.0, %v1566_v2  ;;  %v409_v6 = vmul.f32 0.5, %v2531_v28  ;;  %1587 = verf.f32 %v566_v62  ;;  %v2659_v20 = vld [vmem:[%s1822_s29 + $0x490] sm:$0xff] }
  0xd9   : > { %v1568_v58 = vpop.eup %1567  ;;  %1140 = vst [vmem:[%s1907_s16 + $0x3c0] sm:$0xff] %v993_v47  ;;  %v995_v45 = vmul.f32 %v848_v27, %v407_v11  ;;  %v410_v31 = vmul.f32 0.5, %v2536_v13  ;;  %1589 = verf.f32 %v567_v53  ;;  %v568_v3 = vmul.f32 0.70710677, %v2602_v38  ;;  %v2655_v11 = vld [vmem:[%s1822_s29 + $0x488] sm:$0xff] }
  0xda   : > { %v1570_v8 = vpop.eup %1569  ;;  %1141 = vst [vmem:[%s1907_s16 + $0x3c8] sm:$0xff] %v994_v37  ;;  %v996_v56 = vmul.f32 %v849_v19, %v408_v48  ;;  %v850_v28 = vadd.f32 1.0, %v1568_v58  ;;  %v411_v42 = vmul.f32 0.5, %v2540_v7  ;;  %v569_v46 = vmul.f32 0.70710677, %v2607_v60 }
  0xdb   : > { %v1572_v63 = vpop.eup %1571  ;;  %1142 = vst [vmem:[%s1907_s16 + $0x3d0] sm:$0xff] %v995_v45  ;;  %v851_v25 = vadd.f32 1.0, %v1570_v8  ;;  %v412_v13 = vmul.f32 0.5, %v2545_v54  ;;  %1591 = verf.f32 %v568_v3  ;;  %v570_v41 = vmul.f32 0.70710677, %v2611_v1 }
  0xdc   : > { %v1574_v35 = vpop.eup %1573  ;;  %1143 = vst [vmem:[%s1907_s16 + $0x3d8] sm:$0xff] %v996_v56  ;;  %v997_v22 = vmul.f32 %v850_v28, %v409_v6  ;;  %v852_v15 = vadd.f32 1.0, %v1572_v63  ;;  %1593 = verf.f32 %v569_v46  ;;  %v571_v7 = vmul.f32 0.70710677, %v2617_v57 }
  0xdd   : > { %v998_v51 = vmul.f32 %v851_v25, %v410_v31  ;;  %v853_v43 = vadd.f32 1.0, %v1574_v35  ;;  %v413_v54 = vmul.f32 0.5, %v2554_v30  ;;  %1595 = verf.f32 %v570_v41 }
  0xde   : > { %v1576_v61 = vpop.eup %1575  ;;  %1144 = vst [vmem:[%s1907_s16 + $0x3e0] sm:$0xff] %v997_v22  ;;  %v999_v17 = vmul.f32 %v852_v15, %v411_v42  ;;  %v414_v23 = vmul.f32 0.5, %v2559_v18  ;;  %1597 = verf.f32 %v571_v7  ;;  %v572_v24 = vmul.f32 0.70710677, %v2626_v55 }
  0xdf   : > { %v1578_v21 = vpop.eup %1577  ;;  %1145 = vst [vmem:[%s1907_s16 + $0x3e8] sm:$0xff] %v998_v51  ;;  %v1000_v44 = vmul.f32 %v853_v43, %v412_v13  ;;  %v854_v30 = vadd.f32 1.0, %v1576_v61  ;;  %v415_v34 = vmul.f32 0.5, %v2564_v32  ;;  %v573_v29 = vmul.f32 0.70710677, %v2631_v59 }
  0xe0   : > { %v1580_v4 = vpop.eup %1579  ;;  %1146 = vst [vmem:[%s1907_s16 + $0x3f0] sm:$0xff] %v999_v17  ;;  %v855_v33 = vadd.f32 1.0, %v1578_v21  ;;  %v416_v18 = vmul.f32 0.5, %v2569_v36  ;;  %1599 = verf.f32 %v572_v24  ;;  %v574_v12 = vmul.f32 0.70710677, %v2635_v0 }
  0xe1   : > { %v1582_v26 = vpop.eup %1581  ;;  %1147 = vst [vmem:[%s1907_s16 + $0x3f8] sm:$0xff] %v1000_v44  ;;  %v1001_v49 = vmul.f32 %v854_v30, %v413_v54  ;;  %v856_v52 = vadd.f32 1.0, %v1580_v4  ;;  %1601 = verf.f32 %v573_v29  ;;  %v575_v32 = vmul.f32 0.70710677, %v2641_v39 }
  0xe2   : > { %v1002_v14 = vmul.f32 %v855_v33, %v414_v23  ;;  %v857_v50 = vadd.f32 1.0, %v1582_v26  ;;  %v417_v36 = vmul.f32 0.5, %v2578_v40  ;;  %1603 = verf.f32 %v574_v12 }
  0xe3   : > { %v1584_v48 = vpop.eup %1583  ;;  %1148 = vst [vmem:[%s1907_s16 + $0x400] sm:$0xff] %v1001_v49  ;;  %v1003_v62 = vmul.f32 %v856_v52, %v415_v34  ;;  %v418_v2 = vmul.f32 0.5, %v2583_v9  ;;  %1605 = verf.f32 %v575_v32  ;;  %v576_v47 = vmul.f32 0.70710677, %v2650_v16 }
  0xe4   : > { %v1586_v27 = vpop.eup %1585  ;;  %1149 = vst [vmem:[%s1907_s16 + $0x408] sm:$0xff] %v1002_v14  ;;  %v1004_v53 = vmul.f32 %v857_v50, %v416_v18  ;;  %v858_v37 = vadd.f32 1.0, %v1584_v48  ;;  %v419_v19 = vmul.f32 0.5, %v2587_v5  ;;  %v577_v40 = vmul.f32 0.70710677, %v2655_v11 }
  0xe5   : > { %v1588_v6 = vpop.eup %1587  ;;  %1150 = vst [vmem:[%s1907_s16 + $0x410] sm:$0xff] %v1003_v62  ;;  %v859_v58 = vadd.f32 1.0, %v1586_v27  ;;  %v420_v45 = vmul.f32 0.5, %v2593_v10  ;;  %1607 = verf.f32 %v576_v47  ;;  %v578_v9 = vmul.f32 0.70710677, %v2659_v20 }
  0xe6   : > { %v1590_v31 = vpop.eup %1589  ;;  %1151 = vst [vmem:[%s1907_s16 + $0x418] sm:$0xff] %v1004_v53  ;;  %v1005_v3 = vmul.f32 %v858_v37, %v417_v36  ;;  %v860_v8 = vadd.f32 1.0, %v1588_v6  ;;  %1609 = verf.f32 %v577_v40  ;;  %v421_v28 = vmul.f32 0.5, %v2602_v38 }
  0xe7   : > { %v1006_v56 = vmul.f32 %v859_v58, %v418_v2  ;;  %v861_v5 = vadd.f32 1.0, %v1590_v31  ;;  %1611 = verf.f32 %v578_v9  ;;  %v422_v10 = vmul.f32 0.5, %v2607_v60 }
  0xe8   : > { %v1592_v42 = vpop.eup %1591  ;;  %1152 = vst [vmem:[%s1907_s16 + $0x420] sm:$0xff] %v1005_v3  ;;  %v1007_v46 = vmul.f32 %v860_v8, %v419_v19  ;;  %v423_v41 = vmul.f32 0.5, %v2611_v1  ;;  %v424_v38 = vmul.f32 0.5, %v2617_v57  ;;  %v425_v54 = vmul.f32 0.5, %v2626_v55 }
  0xe9   : > { %v1594_v63 = vpop.eup %1593  ;;  %1153 = vst [vmem:[%s1907_s16 + $0x428] sm:$0xff] %v1006_v56  ;;  %v1008_v25 = vmul.f32 %v861_v5, %v420_v45  ;;  %v862_v13 = vadd.f32 1.0, %v1592_v42  ;;  %v426_v1 = vmul.f32 0.5, %v2631_v59  ;;  %v427_v21 = vmul.f32 0.5, %v2635_v0 }
  0xea   : > { %v1596_v35 = vpop.eup %1595  ;;  %1154 = vst [vmem:[%s1907_s16 + $0x430] sm:$0xff] %v1007_v46  ;;  %v863_v22 = vadd.f32 1.0, %v1594_v63  ;;  %v428_v34 = vmul.f32 0.5, %v2641_v39  ;;  %v429_v18 = vmul.f32 0.5, %v2650_v16  ;;  %v430_v26 = vmul.f32 0.5, %v2655_v11 }
  0xeb   : > { %v1598_v15 = vpop.eup %1597  ;;  %1155 = vst [vmem:[%s1907_s16 + $0x438] sm:$0xff] %v1008_v25  ;;  %v1009_v7 = vmul.f32 %v862_v13, %v421_v28  ;;  %v864_v51 = vadd.f32 1.0, %v1596_v35  ;;  %v431_v32 = vmul.f32 0.5, %v2659_v20 }
  0xec   : > { %v1010_v43 = vmul.f32 %v863_v22, %v422_v10  ;;  %v865_v60 = vadd.f32 1.0, %v1598_v15 }
  0xed   : > { %v1600_v61 = vpop.eup %1599  ;;  %1156 = vst [vmem:[%s1907_s16 + $0x440] sm:$0xff] %v1009_v7  ;;  %v1011_v17 = vmul.f32 %v864_v51, %v423_v41 }
  0xee   : > { %v1602_v23 = vpop.eup %1601  ;;  %1157 = vst [vmem:[%s1907_s16 + $0x448] sm:$0xff] %v1010_v43  ;;  %v1012_v24 = vmul.f32 %v865_v60, %v424_v38  ;;  %v866_v57 = vadd.f32 1.0, %v1600_v61 }
  0xef   : > { %v1604_v44 = vpop.eup %1603  ;;  %1158 = vst [vmem:[%s1907_s16 + $0x450] sm:$0xff] %v1011_v17  ;;  %v867_v30 = vadd.f32 1.0, %v1602_v23 }
  0xf0   : > { %v1606_v55 = vpop.eup %1605  ;;  %1159 = vst [vmem:[%s1907_s16 + $0x458] sm:$0xff] %v1012_v24  ;;  %v1013_v29 = vmul.f32 %v866_v57, %v425_v54  ;;  %v868_v4 = vadd.f32 1.0, %v1604_v44 }
  0xf1   : > { %v1014_v59 = vmul.f32 %v867_v30, %v426_v1  ;;  %v869_v33 = vadd.f32 1.0, %v1606_v55 }
  0xf2   : > { %v1608_v12 = vpop.eup %1607  ;;  %1160 = vst [vmem:[%s1907_s16 + $0x460] sm:$0xff] %v1013_v29  ;;  %v1015_v0 = vmul.f32 %v868_v4, %v427_v21 }
  0xf3   : > { %v1610_v49 = vpop.eup %1609  ;;  %1161 = vst [vmem:[%s1907_s16 + $0x468] sm:$0xff] %v1014_v59  ;;  %v1016_v39 = vmul.f32 %v869_v33, %v428_v34  ;;  %v870_v52 = vadd.f32 1.0, %v1608_v12 }
  0xf4   : > { %v1612_v14 = vpop.eup %1611  ;;  %1162 = vst [vmem:[%s1907_s16 + $0x470] sm:$0xff] %v1015_v0  ;;  %v871_v16 = vadd.f32 1.0, %v1610_v49 }
  0xf5   : > { %1163 = vst [vmem:[%s1907_s16 + $0x478] sm:$0xff] %v1016_v39  ;;  %v1017_v50 = vmul.f32 %v870_v52, %v429_v18  ;;  %v872_v36 = vadd.f32 1.0, %v1612_v14 }
  0xf6   : > { %v1018_v11 = vmul.f32 %v871_v16, %v430_v26 }
  0xf7   : > { %1164 = vst [vmem:[%s1907_s16 + $0x480] sm:$0xff] %v1017_v50  ;;  %v1019_v20 = vmul.f32 %v872_v36, %v431_v32 }
  0xf8   : > { %1165 = vst [vmem:[%s1907_s16 + $0x488] sm:$0xff] %v1018_v11 }
  0xf9   : > { %1166 = vst [vmem:[%s1907_s16 + $0x490] sm:$0xff] %v1019_v20 }
  0xfa   : > { %1654 = shalt.err (!%p1651_p10)
}
  0xfb   : > { %s1655_s11 = scalar_lea.hbm %s2699_s28, 18816  ;;  %s1659_s19 = scalar_lea.hbm %s2748_s1, 37632 }
  0xfc   : > { %p1656_p1 = scmp.ne.s32.totalorder %s2699_s28, %s1655_s11  ;;  %p1660_p0 = scmp.lt.s32.totalorder %s2699_s28, %s2748_s1 }
  0xfd   : > { %p1661_p2 = scmp.lt.s32.totalorder %s1659_s19, %s1655_s11 }
  0xfe   : > { %p1657_p3 = pnand %p1656_p1, %p2757_p12 }
  0xff   : > { %p1662_p6 = por %p1661_p2, %p1660_p0 }
 0x100   : > { %p1658_p9 = pneg %p1657_p3 }
 0x102   : > { %p1663_p11 = pnand %p1662_p6, %p1658_p9 }
 0x104   : > { %1666 = shalt.err (!%p1663_p11)
}
 0x105   : > { %s1711_s24 = smov 896   ;;  %s1712_s26 = smov 56  }
 0x106   : > { %1269 = dma.vmem_to_hbm [thread:$0]  (%p2757_p12), %s2701_s25, 18816, %s2699_s28, %s1168_s30, %s1711_s24, %s1711_s24, %s1712_s26  }
 0x107 PF: > { %s1197_s29 = sand.u32 1, %s1693_s6   ;;  %p2758_p13 = scmp.ne.s32.totalorder %s2753_s18, 0 }
 0x108   : > { %p2759_p4 = scmp.ge.s32.totalorder %s1705_s9, 2  ;;  %s1198_s16 = scalar_lea.sflag [#allocation4], %s1197_s29 }
 0x10a   : > { %p1276_p5 = pnand %p2759_p4, %p2758_p13 }
 0x10c   : > { %p1277_p7 = pneg %p1276_p5 }
 0x10e   : > { %1688 = dma.done.wait (%p1277_p7), %s1198_s16, 18816  }
 0x10f   : > { %1690 = vsyncadd (%p1277_p7), %s1198_s16, 4294948480  ;;  %p14_p8 = scmp.ge.s32.totalorder %s1748_s12, 4   ;;  %s2760_s6 = smov %s1697_s7 }
 0x110   : > { %s2761_s7 = smov %s1701_s8  ;;  %s2762_s8 = smov %s1760_s15 }
 0x111   : > { %s2763_s9 = smov %s1748_s12  ;;  %16 = sbr.rel (!%p14_p8) target bundleno = 5 (0x5), region = 69 }
 0x116   :  { %1203 = vsyncpa [#allocation3], 1 }
 0x117   :  { %1205 = vsyncpa [#allocation3 + $0x1], 1 }
 0x118   :  { %1206 = vsyncpa [#allocation4], 1 }
 0x119   :  { %1208 = vsyncpa [#allocation4 + $0x1], 1 }

</bundles_post_ra>
